<compile_context>
chip_gen: v5e
topology: v5e:2x2
jax: 0.10.0
libtpu: 0.0.40
codegen_flags: <defaults>
</compile_context>

<pallas_src>
import functools

import jax
import jax.numpy as jnp
from jax.experimental import pallas as pl
from jax.experimental.pallas import tpu as pltpu


def _interest_pooling2_kernel(
    q_ref,        # (TB, 1, K)   queries
    keys_ref,     # (TB, T, K)   keys
    bags_ref,     # (TB, T, 1)   bags_Xi (float; != 0 means valid slot)
    w1_ref, b1_ref,   # (4K, H1p), (1, H1p)   zero-padded d_l1
    w2_ref, b2_ref,   # (H1p, H2p), (1, H2p)  zero-padded d_l2
    w3t_ref, b3_ref,  # (1, 1, H2p), (1, 1)   zero-padded d_l3 (transposed)
    o_ref,        # (TB, K)
    *, t, kdim, h2dim,
):
    q = q_ref[...]                      # (TB, 1, K)
    keys = keys_ref[...]                # (TB, T, K)
    tb = keys.shape[0]

    qb = jnp.broadcast_to(q, keys.shape)                       # (TB, T, K)
    # din_all = [q, keys, q - keys, q * keys]  -> (TB, T, 4K)
    din = jnp.concatenate([qb, keys, qb - keys, qb * keys], axis=-1)
    din2 = din.reshape(tb * t, 4 * kdim)                       # keeps last dim

    # d_l1 -> sigmoid   (hidden dims zero-padded to 128; exact, see wrapper)
    h1 = jnp.dot(din2, w1_ref[...], preferred_element_type=jnp.float32) + b1_ref[...]
    h1 = jax.nn.sigmoid(h1)

    # d_l2 -> sigmoid
    h2 = jnp.dot(h1, w2_ref[...], preferred_element_type=jnp.float32) + b2_ref[...]
    h2 = jax.nn.sigmoid(h2)
    h2_3 = h2.reshape(tb, t, h2dim)                            # keeps last dim

    # d_l3 as a lane-reduce against w3^T -> attention logits in (TB, T, 1)
    att = jnp.sum(h2_3 * w3t_ref[...], axis=-1, keepdims=True) + b3_ref[...]

    # mask padded slots with -2^32 + 1 (as the PyTorch module does)
    neg_pad = jnp.float32(-(2.0 ** 32) + 1.0)
    att = jnp.where(bags_ref[...] != 0.0, att, neg_pad)

    # numerically-stable softmax over the T slots; normalization on the EUP
    att = att - jnp.max(att, axis=1, keepdims=True)
    p = jnp.exp(att)
    p = p * pl.reciprocal(jnp.sum(p, axis=1, keepdims=True), approx=True)

    # einsum('nt,ntk->nk'): weighted sum of keys over the T slots
    pooled = jnp.sum(p * keys, axis=1, keepdims=True)          # (TB, 1, K)
    o_ref[...] = pooled.reshape(tb, kdim).astype(o_ref.dtype)


def interest_pooling2(queries, keys, bags_xi, params, *, batch_tile=256):
    """Pallas-backed forward pass of InterestPooling2.

    queries: (N, 1, K), keys: (N, T, K), bags_xi: (N, T).
    params = (w1, b1, w2, b2, w3, b3) stored as (in, out) / (1, out).
    """
    w1, b1, w2, b2, w3, b3 = params
    N, T, K = keys.shape
    H1P, H2P = 128, 128  # zero-padded hidden dims (40 -> 128, 20 -> 128)

    # Zero-padding is numerically exact: padded h1/h2 columns are sigmoid(0)=0.5
    # but they only ever multiply zero-padded rows of W2 / W3.
    w1p = jnp.zeros((4 * K, H1P), jnp.float32).at[:, : w1.shape[1]].set(w1)
    b1p = jnp.zeros((1, H1P), jnp.float32).at[:, : b1.shape[1]].set(b1)
    w2p = jnp.zeros((H1P, H2P), jnp.float32).at[: w2.shape[0], : w2.shape[1]].set(w2)
    b2p = jnp.zeros((1, H2P), jnp.float32).at[:, : b2.shape[1]].set(b2)
    w3t = jnp.zeros((1, 1, H2P), jnp.float32).at[0, 0, : w3.shape[0]].set(w3[:, 0])
    b3r = b3.reshape(1, 1).astype(jnp.float32)

    bags3 = bags_xi.reshape(N, T, 1).astype(jnp.float32)
    queries = queries.astype(jnp.float32)
    keys = keys.astype(jnp.float32)

    # Batch tile: multiple of 8 sublanes (or the full batch). Cap per-generation
    # VMEM budgets are respected since one tile is only TB*(T+2)*K*4 bytes.
    tb = min(batch_tile, N)
    if tb != N and tb % 8 != 0:
        tb = max(8, (tb // 8) * 8)
    grid = (pl.cdiv(N, tb),)

    kernel = functools.partial(_interest_pooling2_kernel, t=T, kdim=K, h2dim=H2P)

    def batch_spec(tail):
        nz = len(tail)
        return pl.BlockSpec((tb,) + tail, lambda i, _nz=nz: (i,) + (0,) * _nz)

    def const_spec(shape):
        nd = len(shape)
        return pl.BlockSpec(shape, lambda i, _nd=nd: (0,) * _nd)

    flops = int(2 * N * T * (4 * K * H1P + H1P * H2P + H2P) + 4 * N * T * K)
    transcendentals = int(N * T * (H1P + H2P + 1))
    bytes_accessed = int(
        4 * (N * (K + T * K + T + K)
             + 4 * K * H1P + H1P + H1P * H2P + H2P + H2P + 1))
    cost = pl.CostEstimate(flops=flops, transcendentals=transcendentals,
                           bytes_accessed=bytes_accessed)

    return pl.pallas_call(
        kernel,
        out_shape=jax.ShapeDtypeStruct((N, K), jnp.float32),
        grid=grid,
        in_specs=[
            batch_spec((1, K)),          # queries
            batch_spec((T, K)),          # keys
            batch_spec((T, 1)),          # bags_Xi
            const_spec(w1p.shape), const_spec(b1p.shape),
            const_spec(w2p.shape), const_spec(b2p.shape),
            const_spec(w3t.shape), const_spec(b3r.shape),
        ],
        out_specs=batch_spec((K,)),
        compiler_params=pltpu.CompilerParams(
            dimension_semantics=("parallel",),
            vmem_limit_bytes=32 * 1024 * 1024,
        ),
        cost_estimate=cost,
    )(queries, keys, bags3, w1p, b1p, w2p, b2p, w3t, b3r)


def _init_params(key, k):
    """Deterministic init mimicking nn.Linear default (uniform +/- 1/sqrt(fan_in))."""
    dims = [(4 * k, 40), (40, 20), (20, 1)]
    params = []
    for fan_in, fan_out in dims:
        key, kw, kb = jax.random.split(key, 3)
        bound = 1.0 / jnp.sqrt(jnp.float32(fan_in))
        w = jax.random.uniform(kw, (fan_in, fan_out), jnp.float32, -bound, bound)
        b = jax.random.uniform(kb, (1, fan_out), jnp.float32, -bound, bound)
        params += [w, b]
    return tuple(params)


def _reference(queries, keys, bags_xi, params):
    """Pure-JAX reference mirroring the PyTorch forward, for verification."""
    w1, b1, w2, b2, w3, b3 = params
    N, T, K = keys.shape
    q = jnp.broadcast_to(queries, (N, T, K))
    din = jnp.concatenate([q, keys, q - keys, q * keys], axis=-1)
    h = jax.nn.sigmoid(din.reshape(N * T, 4 * K) @ w1 + b1)
    h = jax.nn.sigmoid(h @ w2 + b2)
    att = (h @ w3 + b3).reshape(N, T)
    att = jnp.where(bags_xi != 0, att, jnp.float32(-(2.0 ** 32) + 1.0))
    att = jax.nn.softmax(att, axis=-1)
    return jnp.einsum("nt,ntk->nk", att, keys)


if __name__ == "__main__":
    # N batch rows, T history slots, K = module's k feature dim (d_l1 is Linear(4k, 40))
    N, T, K = 16, 8, 8

    key = jax.random.PRNGKey(0)
    key, kq, kk, kb, kp = jax.random.split(key, 5)

    queries = jax.random.normal(kq, (N, 1, K), jnp.float32)
    keys = jax.random.normal(kk, (N, T, K), jnp.float32)
    # bags_Xi: integer-like ids; zeros mark padded slots
    bags_xi = jax.random.randint(kb, (N, T), 0, 3).astype(jnp.float32)

    params = _init_params(kp, K)

    out = interest_pooling2(queries, keys, bags_xi, params, batch_tile=8)
    out = jax.block_until_ready(out)

    ref = _reference(queries, keys, bags_xi, params)
    assert out.shape == (N, K)
    assert jnp.allclose(out, ref, atol=2e-3, rtol=2e-3), "mismatch vs reference"

    print("KERNEL_OK")
</pallas_src>

<mosaic_0001>
module attributes {stable_mosaic.version = 11 : i64} {
  func.func @_interest_pooling2_kernel(%arg0: i32, %arg1: memref<8x1x8xf32, #tpu.memory_space<vmem>>, %arg2: memref<8x8x8xf32, #tpu.memory_space<vmem>>, %arg3: memref<8x8x1xf32, #tpu.memory_space<vmem>>, %arg4: memref<32x128xf32, #tpu.memory_space<vmem>>, %arg5: memref<1x128xf32, #tpu.memory_space<vmem>>, %arg6: memref<128x128xf32, #tpu.memory_space<vmem>>, %arg7: memref<1x128xf32, #tpu.memory_space<vmem>>, %arg8: memref<1x1x128xf32, #tpu.memory_space<vmem>>, %arg9: memref<1x1xf32, #tpu.memory_space<vmem>>, %arg10: memref<8x8xf32, #tpu.memory_space<vmem>>) attributes {dimension_semantics = [#tpu.dimension_semantics<parallel>], iteration_bounds = array<i64: 2>, scalar_prefetch = 0 : i64, scratch_operands = 0 : i64, tpu.core_type = #tpu.core_type<tc>, window_params = [{transform_indices = @transform_0, window_bounds = array<i64: 8, 1, 8>}, {transform_indices = @transform_1, window_bounds = array<i64: 8, 8, 8>}, {transform_indices = @transform_2, window_bounds = array<i64: 8, 8, 1>}, {pipeline_mode = #tpu.pipeline_mode<synchronous>, transform_indices = @transform_3, window_bounds = array<i64: 32, 128>}, {pipeline_mode = #tpu.pipeline_mode<synchronous>, transform_indices = @transform_4, window_bounds = array<i64: 1, 128>}, {pipeline_mode = #tpu.pipeline_mode<synchronous>, transform_indices = @transform_5, window_bounds = array<i64: 128, 128>}, {pipeline_mode = #tpu.pipeline_mode<synchronous>, transform_indices = @transform_6, window_bounds = array<i64: 1, 128>}, {pipeline_mode = #tpu.pipeline_mode<synchronous>, transform_indices = @transform_7, window_bounds = array<i64: 1, 1, 128>}, {pipeline_mode = #tpu.pipeline_mode<synchronous>, transform_indices = @transform_8, window_bounds = array<i64: 1, 1>}, {transform_indices = @transform_9, window_bounds = array<i64: 8, 8>}]} {
    %c0 = arith.constant 0 : index
    %c0_0 = arith.constant 0 : index
    %c0_1 = arith.constant 0 : index
    %0 = vector.load %arg1[%c0, %c0_0, %c0_1] : memref<8x1x8xf32, #tpu.memory_space<vmem>>, vector<8x1x8xf32>
    %c0_2 = arith.constant 0 : index
    %c0_3 = arith.constant 0 : index
    %c0_4 = arith.constant 0 : index
    %1 = vector.load %arg2[%c0_2, %c0_3, %c0_4] : memref<8x8x8xf32, #tpu.memory_space<vmem>>, vector<8x8x8xf32>
    %2 = vector.shape_cast %0 : vector<8x1x8xf32> to vector<8x1x8xf32>
    %3 = vector.broadcast %2 : vector<8x1x8xf32> to vector<8x8x8xf32>
    %4 = arith.subf %3, %1 : vector<8x8x8xf32>
    %5 = arith.mulf %3, %1 : vector<8x8x8xf32>
    %6 = tpu.concatenate %3, %1, %4, %5 in 2 : vector<8x8x8xf32>, vector<8x8x8xf32>, vector<8x8x8xf32>, vector<8x8x8xf32> -> vector<8x8x32xf32>
    %7 = vector.shape_cast %6 : vector<8x8x32xf32> to vector<64x32xf32>
    %c0_5 = arith.constant 0 : index
    %c0_6 = arith.constant 0 : index
    %8 = vector.load %arg4[%c0_5, %c0_6] : memref<32x128xf32, #tpu.memory_space<vmem>>, vector<32x128xf32>
    %cst = arith.constant dense<0.000000e+00> : vector<64x128xf32>
    %9 = tpu.matmul %7, %8, %cst {dimension_numbers = #tpu.dot_dimension_numbers<[1], [0], [0], [1], [0, 0, 1, 1], [], []>} : vector<64x32xf32>, vector<32x128xf32>, vector<64x128xf32> -> vector<64x128xf32>
    %c0_7 = arith.constant 0 : index
    %c0_8 = arith.constant 0 : index
    %10 = vector.load %arg5[%c0_7, %c0_8] : memref<1x128xf32, #tpu.memory_space<vmem>>, vector<1x128xf32>
    %11 = vector.broadcast %10 : vector<1x128xf32> to vector<64x128xf32>
    %12 = arith.addf %9, %11 : vector<64x128xf32>
    %13 = arith.negf %12 : vector<64x128xf32>
    %14 = math.exp %13 : vector<64x128xf32>
    %cst_9 = arith.constant 1.000000e+00 : f32
    %15 = vector.broadcast %cst_9 : f32 to vector<64x128xf32>
    %16 = arith.addf %15, %14 : vector<64x128xf32>
    %17 = arith.divf %15, %16 : vector<64x128xf32>
    %c0_10 = arith.constant 0 : index
    %c0_11 = arith.constant 0 : index
    %18 = vector.load %arg6[%c0_10, %c0_11] : memref<128x128xf32, #tpu.memory_space<vmem>>, vector<128x128xf32>
    %cst_12 = arith.constant dense<0.000000e+00> : vector<64x128xf32>
    %19 = tpu.matmul %17, %18, %cst_12 {dimension_numbers = #tpu.dot_dimension_numbers<[1], [0], [0], [1], [0, 0, 1, 1], [], []>} : vector<64x128xf32>, vector<128x128xf32>, vector<64x128xf32> -> vector<64x128xf32>
    %c0_13 = arith.constant 0 : index
    %c0_14 = arith.constant 0 : index
    %20 = vector.load %arg7[%c0_13, %c0_14] : memref<1x128xf32, #tpu.memory_space<vmem>>, vector<1x128xf32>
    %21 = vector.broadcast %20 : vector<1x128xf32> to vector<64x128xf32>
    %22 = arith.addf %19, %21 : vector<64x128xf32>
    %23 = arith.negf %22 : vector<64x128xf32>
    %24 = math.exp %23 : vector<64x128xf32>
    %cst_15 = arith.constant 1.000000e+00 : f32
    %25 = vector.broadcast %cst_15 : f32 to vector<64x128xf32>
    %26 = arith.addf %25, %24 : vector<64x128xf32>
    %27 = arith.divf %25, %26 : vector<64x128xf32>
    %28 = vector.shape_cast %27 : vector<64x128xf32> to vector<8x8x128xf32>
    %c0_16 = arith.constant 0 : index
    %c0_17 = arith.constant 0 : index
    %c0_18 = arith.constant 0 : index
    %29 = vector.load %arg8[%c0_16, %c0_17, %c0_18] : memref<1x1x128xf32, #tpu.memory_space<vmem>>, vector<1x1x128xf32>
    %30 = vector.broadcast %29 : vector<1x1x128xf32> to vector<8x8x128xf32>
    %31 = arith.mulf %28, %30 : vector<8x8x128xf32>
    %cst_19 = arith.constant dense<0.000000e+00> : vector<8x8xf32>
    %32 = vector.multi_reduction <add>, %31, %cst_19 [2] : vector<8x8x128xf32> to vector<8x8xf32>
    %33 = vector.shape_cast %32 : vector<8x8xf32> to vector<8x8x1xf32>
    %c0_20 = arith.constant 0 : index
    %c0_21 = arith.constant 0 : index
    %34 = vector.load %arg9[%c0_20, %c0_21] : memref<1x1xf32, #tpu.memory_space<vmem>>, vector<1x1xf32>
    %35 = vector.shape_cast %34 : vector<1x1xf32> to vector<1x1x1xf32>
    %36 = vector.broadcast %35 : vector<1x1x1xf32> to vector<8x8x1xf32>
    %37 = arith.addf %33, %36 : vector<8x8x1xf32>
    %c0_22 = arith.constant 0 : index
    %c0_23 = arith.constant 0 : index
    %c0_24 = arith.constant 0 : index
    %38 = vector.load %arg3[%c0_22, %c0_23, %c0_24] : memref<8x8x1xf32, #tpu.memory_space<vmem>>, vector<8x8x1xf32>
    %cst_25 = arith.constant 0.000000e+00 : f32
    %39 = vector.broadcast %cst_25 : f32 to vector<8x8x1xf32>
    %40 = arith.cmpf one, %38, %39 : vector<8x8x1xf32>
    %cst_26 = arith.constant -4.2949673E+9 : f32
    %41 = vector.broadcast %cst_26 : f32 to vector<8x8x1xf32>
    %42 = arith.select %40, %37, %41 : vector<8x8x1xi1>, vector<8x8x1xf32>
    %cst_27 = arith.constant dense<0xFF800000> : vector<8x1xf32>
    %43 = vector.multi_reduction <maximumf>, %42, %cst_27 [1] : vector<8x8x1xf32> to vector<8x1xf32>
    %44 = vector.shape_cast %43 : vector<8x1xf32> to vector<8x1x1xf32>
    %45 = vector.broadcast %44 : vector<8x1x1xf32> to vector<8x8x1xf32>
    %46 = arith.subf %42, %45 : vector<8x8x1xf32>
    %47 = math.exp %46 : vector<8x8x1xf32>
    %cst_28 = arith.constant dense<0.000000e+00> : vector<8x1xf32>
    %48 = vector.multi_reduction <add>, %47, %cst_28 [1] : vector<8x8x1xf32> to vector<8x1xf32>
    %49 = vector.shape_cast %48 : vector<8x1xf32> to vector<8x1x1xf32>
    %50 = tpu.reciprocal %49 {approx = true} : vector<8x1x1xf32> -> vector<8x1x1xf32>
    %51 = vector.broadcast %50 : vector<8x1x1xf32> to vector<8x8x1xf32>
    %52 = arith.mulf %47, %51 : vector<8x8x1xf32>
    %53 = vector.broadcast %52 : vector<8x8x1xf32> to vector<8x8x8xf32>
    %54 = arith.mulf %53, %1 : vector<8x8x8xf32>
    %cst_29 = arith.constant dense<0.000000e+00> : vector<8x8xf32>
    %55 = vector.multi_reduction <add>, %54, %cst_29 [1] : vector<8x8x8xf32> to vector<8x8xf32>
    %56 = vector.shape_cast %55 : vector<8x8xf32> to vector<8x1x8xf32>
    %57 = vector.shape_cast %56 : vector<8x1x8xf32> to vector<8x8xf32>
    %c0_30 = arith.constant 0 : index
    %c0_31 = arith.constant 0 : index
    %58 = vector.load %arg10[%c0_30, %c0_31] : memref<8x8xf32, #tpu.memory_space<vmem>>, vector<8x8xf32>
    tpu.vector_store %arg10[%c0_30, %c0_31], %57 {strides = array<i32>} : memref<8x8xf32, #tpu.memory_space<vmem>>, vector<8x8xf32>,
    return
  }
  func.func @transform_0(%arg0: i32) -> (i32, i32, i32) {
    %c0_i32 = arith.constant 0 : i32
    %c0_i32_0 = arith.constant 0 : i32
    %c0_i32_1 = arith.constant 0 : i32
    return %arg0, %c0_i32, %c0_i32_0 : i32, i32, i32
  }
  func.func @transform_1(%arg0: i32) -> (i32, i32, i32) {
    %c0_i32 = arith.constant 0 : i32
    %c0_i32_0 = arith.constant 0 : i32
    %c0_i32_1 = arith.constant 0 : i32
    return %arg0, %c0_i32, %c0_i32_0 : i32, i32, i32
  }
  func.func @transform_2(%arg0: i32) -> (i32, i32, i32) {
    %c0_i32 = arith.constant 0 : i32
    %c0_i32_0 = arith.constant 0 : i32
    %c0_i32_1 = arith.constant 0 : i32
    return %arg0, %c0_i32, %c0_i32_0 : i32, i32, i32
  }
  func.func @transform_3(%arg0: i32) -> (i32, i32) {
    %c0_i32 = arith.constant 0 : i32
    %c0_i32_0 = arith.constant 0 : i32
    %c0_i32_1 = arith.constant 0 : i32
    return %c0_i32, %c0_i32_0 : i32, i32
  }
  func.func @transform_4(%arg0: i32) -> (i32, i32) {
    %c0_i32 = arith.constant 0 : i32
    %c0_i32_0 = arith.constant 0 : i32
    %c0_i32_1 = arith.constant 0 : i32
    return %c0_i32, %c0_i32_0 : i32, i32
  }
  func.func @transform_5(%arg0: i32) -> (i32, i32) {
    %c0_i32 = arith.constant 0 : i32
    %c0_i32_0 = arith.constant 0 : i32
    %c0_i32_1 = arith.constant 0 : i32
    return %c0_i32, %c0_i32_0 : i32, i32
  }
  func.func @transform_6(%arg0: i32) -> (i32, i32) {
    %c0_i32 = arith.constant 0 : i32
    %c0_i32_0 = arith.constant 0 : i32
    %c0_i32_1 = arith.constant 0 : i32
    return %c0_i32, %c0_i32_0 : i32, i32
  }
  func.func @transform_7(%arg0: i32) -> (i32, i32, i32) {
    %c0_i32 = arith.constant 0 : i32
    %c0_i32_0 = arith.constant 0 : i32
    %c0_i32_1 = arith.constant 0 : i32
    %c0_i32_2 = arith.constant 0 : i32
    return %c0_i32, %c0_i32_0, %c0_i32_1 : i32, i32, i32
  }
  func.func @transform_8(%arg0: i32) -> (i32, i32) {
    %c0_i32 = arith.constant 0 : i32
    %c0_i32_0 = arith.constant 0 : i32
    %c0_i32_1 = arith.constant 0 : i32
    return %c0_i32, %c0_i32_0 : i32, i32
  }
  func.func @transform_9(%arg0: i32) -> (i32, i32) {
    %c0_i32 = arith.constant 0 : i32
    %c0_i32_0 = arith.constant 0 : i32
    return %arg0, %c0_i32 : i32, i32
  }
}

</mosaic_0001>

<bundles_post_ra>
// kernel: tpu_custom_call.1
= control target key start
LH: loop header
LB: loop body
LE: loop exit
PB: predicated region body
PF: predicated region fallthrough
CT: control target
= control target key end

     0   :  { %s1682_s11 = smov 0   ;;  %s1998_s0 = inlined_call_operand.vmem [shape: f32[16,1,8], index: 0, kind: input, shape index: {}]   ;;  %s1999_s1 = inlined_call_operand.vmem [shape: f32[16,8,8], index: 1, kind: input, shape index: {}]   ;;  %s2000_s2 = inlined_call_operand.vmem [shape: f32[16,8,1], index: 2, kind: input, shape index: {}]   ;;  %s2001_s3 = inlined_call_operand.vmem [shape: f32[32,128], index: 3, kind: input, shape index: {}]   ;;  %s2002_s4 = inlined_call_operand.vmem [shape: f32[1,128], index: 4, kind: input, shape index: {}]   ;;  %s2003_s5 = inlined_call_operand.vmem [shape: f32[128,128], index: 5, kind: input, shape index: {}]   ;;  %s2004_s6 = inlined_call_operand.vmem [shape: f32[1,128], index: 6, kind: input, shape index: {}]   ;;  %s2005_s7 = inlined_call_operand.vmem [shape: f32[1,1,128], index: 7, kind: input, shape index: {}]   ;;  %s2006_s8 = inlined_call_operand.<no memory space> [shape: f32[1,1], index: 8, kind: input, shape index: {}]   ;;  %s2007_s9 = inlined_call_operand.vmem [shape: f32[16,8], index: 9, kind: output, shape index: {}]  }
   0x1   :  { %v14_v0 = vstv %s2006_s8 }
   0x2   :  { %15 = vst [vmem:[#allocation2] sm:$0x1] %v14_v0 }
   0x3 LB: > { %s1688_s12 = sadd.s32 4294967295, %s1623_s11   ;;  %p1417_p0 = scmp.ge.s32.totalorder %s1623_s11, 1  ;;  %s1623_s11 = sphi %s1682_s11, %s21_s11  }
   0x4   : > { %p311_p1 = scmp.lt.s32.totalorder %s1623_s11, 3 }
   0x6   : > { %p312_p2 = pnand %p1417_p0, %p311_p1 }
   0x7   : > { %s1418_s13 = sshll.u32 (!%p312_p2), %s1688_s12, 3  ;;  %s1625_s20 = smov (!%p312_p2), 8  }
   0x8   : > { %315 = sbr.rel (%p312_p2) target bundleno = 816 (0x330), region = 56  ;;  %p356_p3 = scmp.lt.s32.totalorder (!%p312_p2), %s1418_s13, 15 }
   0x9   : > { %s1626_s21 = smov (!%p312_p2), 16   ;;  %s1627_s22 = smov (!%p312_p2), 24  }
   0xa   : > { %p372_p4 = scmp.lt.s32.totalorder (!%p312_p2), %s1688_s12, 1 }
   0xd   : > { %s2009_s13 = smov (!%p356_p3, %s1418_s13), 15  ;;  %v558_v33 = vld [vmem:[%s2001_s3 + $0x18] sm:$0xff]  ;;  %v557_v34 = vld [vmem:[%s2001_s3 + $0x10] sm:$0xff]  ;;  %v556_v35 = vld [vmem:[%s2001_s3 + $0x8] sm:$0xff]  ;;  %vm528_vm0 = vcmask 64512   ;;  %vm537_vm1 = vcmask 130048  }
   0xe   : > { %s1420_s8 = sshll.u32 %s2009_s13, 3  ;;  %s1700_s16 = scalar_lea.vmem %s1998_s0, %s2009_s13  ;;  %600 = vmatpush.msra.mxu0 %v558_v33  ;;  %1450 = vmatpush.msra.mxu3 %v558_v33  ;;  %v555_v36 = vld [vmem:[%s2001_s3] sm:$0xff]  ;;  %vm563_vm2 = vcmask 261120   ;;  %vm546_vm3 = vcmask 195584   ;;  %v784_v33 = vld [vmem:[%s2003_s5 + $0x18] sm:$0xff] }
   0xf   : > { %s1707_s19 = scalar_lea.vmem %s1999_s1, %s1420_s8  ;;  %v1714_v3 = vld [vmem:[%s1700_s16] ss:$0 sm:$0xff]  ;;  %v1717_v4 = vld [vmem:[%s1700_s16 + $0x1] ss:$0 sm:$0xff]  ;;  %v1726_v8 = vld [vmem:[%s1700_s16 + $0x2] ss:$0 sm:$0xff] }
  0x10   : > { %v384_v1 = vld [vmem:[%s1707_s19] sm:$0xff]  ;;  %v385_v2 = vld [vmem:[%s1707_s19 + $0x8] sm:$0xff]  ;;  %v386_v9 = vld [vmem:[%s1707_s19 + $0x10] sm:$0xff]  ;;  %601 = vmatpush.msra.mxu0 %v557_v34  ;;  %1451 = vmatpush.msra.mxu3 %v557_v34  ;;  %s2011_s12 = smov (!%p372_p4, %s1688_s12), 1 }
  0x11   : > { %440 = vrot.lane.b32.xlu0 %v384_v1, %s1625_s20  ;;  %442 = vrot.lane.b32.xlu1 %v385_v2, %s1625_s20  ;;  %v417_v5 = vsub.f32 %v1717_v4, %v385_v2  ;;  %v416_v6 = vsub.f32 %v1714_v3, %v384_v1  ;;  %v424_v7 = vmul.f32 %v1714_v3, %v384_v1  ;;  %v1735_v12 = vld [vmem:[%s1700_s16 + $0x3] ss:$0 sm:$0xff]  ;;  %v387_v13 = vld [vmem:[%s1707_s19 + $0x18] sm:$0xff]  ;;  %s1423_s13 = sshll.u32 %s2011_s12, 3 }
  0x12   : > { %v425_v10 = vmul.f32 %v1717_v4, %v385_v2  ;;  %v418_v11 = vsub.f32 %v1726_v8, %v386_v9  ;;  %v426_v14 = vmul.f32 %v1726_v8, %v386_v9  ;;  %v419_v15 = vsub.f32 %v1735_v12, %v387_v13  ;;  %v1744_v16 = vld [vmem:[%s1700_s16 + $0x6] ss:$0 sm:$0xff]  ;;  %v390_v17 = vld [vmem:[%s1707_s19 + $0x30] sm:$0xff]  ;;  %v1753_v20 = vld [vmem:[%s1700_s16 + $0x4] ss:$0 sm:$0xff]  ;;  %602 = vmatpush.msra.mxu0 %v556_v35 }
  0x13   : > { %474 = vrot.lane.b32.xlu2 %v417_v5, %s1626_s21  ;;  %v427_v18 = vmul.f32 %v1735_v12, %v387_v13  ;;  %v422_v19 = vsub.f32 %v1744_v16, %v390_v17  ;;  %v388_v21 = vld [vmem:[%s1707_s19 + $0x20] sm:$0xff]  ;;  %v430_v22 = vmul.f32 %v1744_v16, %v390_v17  ;;  %v391_v25 = vld [vmem:[%s1707_s19 + $0x38] sm:$0xff]  ;;  %v389_v29 = vld [vmem:[%s1707_s19 + $0x28] sm:$0xff]  ;;  %1452 = vmatpush.msra.mxu3 %v556_v35 }
  0x14   : > { %v420_v23 = vsub.f32 %v1753_v20, %v388_v21  ;;  %v1762_v24 = vld [vmem:[%s1700_s16 + $0x7] ss:$0 sm:$0xff]  ;;  %v428_v26 = vmul.f32 %v1753_v20, %v388_v21  ;;  %v1771_v28 = vld [vmem:[%s1700_s16 + $0x5] ss:$0 sm:$0xff]  ;;  %603 = vmatpush.msra.mxu0 %v555_v36  ;;  %v783_v34 = vld [vmem:[%s2003_s5 + $0x10] sm:$0xff] }
  0x15   : > { %v423_v27 = vsub.f32 %v1762_v24, %v391_v25  ;;  %v431_v30 = vmul.f32 %v1762_v24, %v391_v25  ;;  %v421_v31 = vsub.f32 %v1771_v28, %v389_v29  ;;  %v429_v32 = vmul.f32 %v1771_v28, %v389_v29  ;;  %1453 = vmatpush.msra.mxu3 %v555_v36  ;;  %v782_v35 = vld [vmem:[%s2003_s5 + $0x8] sm:$0xff]  ;;  %v1881_v36 = vld [vmem:[%s2002_s4] ss:$0 sm:$0xff] }
  0x19   : > { %472 = vrot.lane.b32.xlu0 %v416_v6, %s1626_s21  ;;  %504 = vrot.lane.b32.xlu1 %v424_v7, %s1627_s22 }
  0x1b   : > { %506 = vrot.lane.b32.xlu2 %v425_v10, %s1627_s22 }
  0x21   : > { %444 = vrot.lane.b32.xlu0 %v386_v9, %s1625_s20  ;;  %476 = vrot.lane.b32.xlu1 %v418_v11, %s1626_s21 }
  0x23   : > { %508 = vrot.lane.b32.xlu2 %v426_v14, %s1627_s22 }
  0x29   : > { %446 = vrot.lane.b32.xlu0 %v387_v13, %s1625_s20  ;;  %478 = vrot.lane.b32.xlu1 %v419_v15, %s1626_s21 }
  0x2b   : > { %510 = vrot.lane.b32.xlu2 %v427_v18, %s1627_s22 }
  0x31   : > { %452 = vrot.lane.b32.xlu0 %v390_v17, %s1625_s20  ;;  %484 = vrot.lane.b32.xlu1 %v422_v19, %s1626_s21 }
  0x33   : > { %516 = vrot.lane.b32.xlu2 %v430_v22, %s1627_s22  ;;  %v795_v22 = vld [vmem:[%s2003_s5 + $0x70] sm:$0xff] }
  0x39   : > { %448 = vrot.lane.b32.xlu0 %v388_v21, %s1625_s20  ;;  %480 = vrot.lane.b32.xlu1 %v420_v23, %s1626_s21  ;;  %v796_v21 = vld [vmem:[%s2003_s5 + $0x78] sm:$0xff]  ;;  %v794_v23 = vld [vmem:[%s2003_s5 + $0x68] sm:$0xff] }
  0x3a   : > { %801 = vmatpush.msra.mxu1 %v796_v21  ;;  %1454 = vmatpush.msra.mxu2 %v796_v21 }
  0x3b   : > { %512 = vrot.lane.b32.xlu2 %v428_v26, %s1627_s22  ;;  %1455 = vmatpush.msrb.mxu3 %v796_v21  ;;  %v791_v26 = vld [vmem:[%s2003_s5 + $0x50] sm:$0xff] }
  0x3c   : > { %802 = vmatpush.msra.mxu1 %v795_v22  ;;  %1456 = vmatpush.msra.mxu2 %v795_v22 }
  0x3d   : > { %1457 = vmatpush.msrb.mxu3 %v795_v22 }
  0x3e   : > { %803 = vmatpush.msra.mxu1 %v794_v23  ;;  %1458 = vmatpush.msra.mxu2 %v794_v23 }
  0x3f   : > { %1459 = vmatpush.msrb.mxu3 %v794_v23 }
  0x41   : > { %454 = vrot.lane.b32.xlu0 %v391_v25, %s1625_s20  ;;  %486 = vrot.lane.b32.xlu1 %v423_v27, %s1626_s21  ;;  %v792_v25 = vld [vmem:[%s2003_s5 + $0x58] sm:$0xff]  ;;  %v790_v27 = vld [vmem:[%s2003_s5 + $0x48] sm:$0xff] }
  0x43   : > { %518 = vrot.lane.b32.xlu2 %v431_v30, %s1627_s22  ;;  %v787_v30 = vld [vmem:[%s2003_s5 + $0x30] sm:$0xff] }
  0x49   : > { %450 = vrot.lane.b32.xlu0 %v389_v29, %s1625_s20  ;;  %482 = vrot.lane.b32.xlu1 %v421_v31, %s1626_s21  ;;  %v788_v29 = vld [vmem:[%s2003_s5 + $0x38] sm:$0xff]  ;;  %v786_v31 = vld [vmem:[%s2003_s5 + $0x28] sm:$0xff]  ;;  %s1925_s20 = scalar_lea.vmem %s2000_s2, %s1420_s8  ;;  %s375_s21 = scalar_lea.vmem %s2007_s9, %s1423_s13 }
  0x4b   : > { %514 = vrot.lane.b32.xlu2 %v429_v32, %s1627_s22  ;;  %v785_v32 = vld [vmem:[%s2003_s5 + $0x20] sm:$0xff] }
  0x6d   : > { %v475_v37 = vpop.permute.xlu2 %474 }
  0x75   : > { %v507_v38 = vpop.permute.xlu2 %506 }
  0x7d   : > { %v509_v41 = vpop.permute.xlu2 %508 }
  0x83   : > { %v441_v39 = vpop.permute.xlu0 %440  ;;  %v443_v40 = vpop.permute.xlu1 %442 }
  0x84   : > { %v529_v42 = vsel %vm528_vm0, %v1714_v3, %v441_v39  ;;  %v530_v47 = vsel %vm528_vm0, %v1717_v4, %v443_v40 }
  0x85   : > { %v539_v48 = vsel %vm537_vm1, %v530_v47, %v475_v37  ;;  %v511_v49 = vpop.permute.xlu2 %510  ;;  %v781_v37 = vld [vmem:[%s2003_s5] sm:$0xff] }
  0x86   : > { %v548_v52 = vsel %vm546_vm3, %v539_v48, %v507_v38 }
  0x8b   : > { %v473_v43 = vpop.permute.xlu0 %472  ;;  %v505_v44 = vpop.permute.xlu1 %504 }
  0x8c   : > { %v538_v45 = vsel %vm537_vm1, %v529_v42, %v473_v43 }
  0x8d   : > { %v547_v46 = vsel %vm546_vm3, %v538_v45, %v505_v44  ;;  %v517_v57 = vpop.permute.xlu2 %516 }
  0x8e   : > { %1424 = vmatmul.msk.f32.vlgmr.msra.gmra.mxu0 %vm563_vm2, %v547_v46 }
  0x93   : > { %v445_v50 = vpop.permute.xlu0 %444  ;;  %v477_v51 = vpop.permute.xlu1 %476 }
  0x94   : > { %v531_v53 = vsel %vm528_vm0, %v1726_v8, %v445_v50 }
  0x95   : > { %v540_v54 = vsel %vm537_vm1, %v531_v53, %v477_v51  ;;  %v513_v3 = vpop.permute.xlu2 %512 }
  0x96   : > { %1425 = vmatmul.msk.f32.gmra.mxu0 %vm563_vm2, %v548_v52  ;;  %v549_v58 = vsel %vm546_vm3, %v540_v54, %v509_v41 }
  0x9b   : > { %v447_v55 = vpop.permute.xlu0 %446  ;;  %v479_v56 = vpop.permute.xlu1 %478 }
  0x9c   : > { %v532_v59 = vsel %vm528_vm0, %v1735_v12, %v447_v55 }
  0x9d   : > { %v541_v60 = vsel %vm537_vm1, %v532_v59, %v479_v56  ;;  %v519_v9 = vpop.permute.xlu2 %518 }
  0x9e   : > { %1426 = vmatmul.msk.f32.gmra.mxu0 %vm563_vm2, %v549_v58  ;;  %v550_v1 = vsel %vm546_vm3, %v541_v60, %v511_v49 }
  0xa3   : > { %v453_v61 = vpop.permute.xlu0 %452  ;;  %v485_v62 = vpop.permute.xlu1 %484 }
  0xa4   : > { %v535_v63 = vsel %vm528_vm0, %v1744_v16, %v453_v61 }
  0xa5   : > { %v544_v0 = vsel %vm537_vm1, %v535_v63, %v485_v62  ;;  %v515_v15 = vpop.permute.xlu2 %514 }
  0xa6   : > { %1427 = vmatmul.msk.f32.gmra.mxu0 %vm563_vm2, %v550_v1  ;;  %v553_v2 = vsel %vm546_vm3, %v544_v0, %v517_v57 }
  0xa7   : > { %1430 = vmatmul.msk.f32.vlgmr.msra.gmra.mxu3 %vm563_vm2, %v553_v2 }
  0xab   : > { %v449_v4 = vpop.permute.xlu0 %448  ;;  %v481_v5 = vpop.permute.xlu1 %480 }
  0xac   : > { %v533_v6 = vsel %vm528_vm0, %v1753_v20, %v449_v4 }
  0xad   : > { %v542_v7 = vsel %vm537_vm1, %v533_v6, %v481_v5 }
  0xae   : > { %v551_v8 = vsel %vm546_vm3, %v542_v7, %v513_v3 }
  0xaf   : > { %1428 = vmatmul.msk.f32.gmra.mxu0 %vm563_vm2, %v551_v8 }
  0xb3   : > { %v455_v10 = vpop.permute.xlu0 %454  ;;  %v487_v11 = vpop.permute.xlu1 %486 }
  0xb4   : > { %v536_v12 = vsel %vm528_vm0, %v1762_v24, %v455_v10  ;;  %v793_v24 = vld [vmem:[%s2003_s5 + $0x60] sm:$0xff] }
  0xb5   : > { %v545_v13 = vsel %vm537_vm1, %v536_v12, %v487_v11  ;;  %804 = vmatpush.msra.mxu1 %v793_v24  ;;  %1460 = vmatpush.msra.mxu2 %v793_v24 }
  0xb6   : > { %v554_v14 = vsel %vm546_vm3, %v545_v13, %v519_v9  ;;  %1461 = vmatpush.msrb.mxu3 %v793_v24 }
  0xb7   : > { %1431 = vmatmul.msk.f32.gmra.mxu3 %vm563_vm2, %v554_v14  ;;  %805 = vmatpush.msra.mxu1 %v792_v25 }
  0xb8   : > { %1462 = vmatpush.msra.mxu2 %v792_v25  ;;  %1463 = vmatpush.msrb.mxu3 %v792_v25 }
  0xb9   : > { %806 = vmatpush.msra.mxu1 %v791_v26 }
  0xba   : > { %1464 = vmatpush.msra.mxu2 %v791_v26  ;;  %1465 = vmatpush.msrb.mxu3 %v791_v26 }
  0xbb   : > { %v451_v16 = vpop.permute.xlu0 %450  ;;  %v483_v17 = vpop.permute.xlu1 %482  ;;  %807 = vmatpush.msra.mxu1 %v790_v27 }
  0xbc   : > { %v534_v18 = vsel %vm528_vm0, %v1771_v28, %v451_v16  ;;  %1466 = vmatpush.msra.mxu2 %v790_v27  ;;  %v789_v28 = vld [vmem:[%s2003_s5 + $0x40] sm:$0xff]  ;;  %1467 = vmatpush.msrb.mxu3 %v790_v27 }
  0xbd   : > { %v543_v19 = vsel %vm537_vm1, %v534_v18, %v483_v17  ;;  %808 = vmatpush.msra.mxu1 %v789_v28 }
  0xbe   : > { %v552_v20 = vsel %vm546_vm3, %v543_v19, %v515_v15  ;;  %1468 = vmatpush.msra.mxu2 %v789_v28  ;;  %1469 = vmatpush.msrb.mxu3 %v789_v28 }
  0xbf   : > { %1429 = vmatmul.msk.f32.gmra.mxu0 %vm563_vm2, %v552_v20  ;;  %809 = vmatpush.msra.mxu1 %v788_v29 }
  0xc0   : > { %1470 = vmatpush.msra.mxu2 %v788_v29  ;;  %1471 = vmatpush.msrb.mxu3 %v788_v29 }
  0xc1   : > { %810 = vmatpush.msra.mxu1 %v787_v30 }
  0xc2   : > { %1472 = vmatpush.msra.mxu2 %v787_v30  ;;  %1473 = vmatpush.msrb.mxu3 %v787_v30 }
  0xc3   : > { %811 = vmatpush.msra.mxu1 %v786_v31 }
  0xc4   : > { %1474 = vmatpush.msra.mxu2 %v786_v31  ;;  %1475 = vmatpush.msrb.mxu3 %v786_v31 }
  0xc5   : > { %812 = vmatpush.msra.mxu1 %v785_v32 }
  0xc6   : > { %1476 = vmatpush.msra.mxu2 %v785_v32  ;;  %1477 = vmatpush.msrb.mxu3 %v785_v32 }
  0xc7   : > { %813 = vmatpush.msra.mxu1 %v784_v33 }
  0xc8   : > { %1478 = vmatpush.msra.mxu2 %v784_v33  ;;  %1479 = vmatpush.msrb.mxu3 %v784_v33 }
  0xc9   : > { %814 = vmatpush.msra.mxu1 %v783_v34 }
  0xca   : > { %1480 = vmatpush.msra.mxu2 %v783_v34  ;;  %1481 = vmatpush.msrb.mxu3 %v783_v34 }
  0xcb   : > { %815 = vmatpush.msra.mxu1 %v782_v35 }
  0xcc   : > { %1482 = vmatpush.msra.mxu2 %v782_v35  ;;  %1483 = vmatpush.msrb.mxu3 %v782_v35 }
  0xcd   : > { %816 = vmatpush.msra.mxu1 %v781_v37 }
  0xce   : > { %1484 = vmatpush.msra.mxu2 %v781_v37  ;;  %1485 = vmatpush.msrb.mxu3 %v781_v37 }
 0x10b   : > { %v605_v38 = vpop.f32.mrf.mxu0 }
 0x10c   : > { %v606_v39 = vadd.f32 %v1881_v36, %v605_v38 }
 0x10e   : > { %v1432_v40 = vmul.f32 -1.442695, %v606_v39 }
 0x110   : > { %1513 = vpow2.f32 %v1432_v40 }
 0x113   : > { %v608_v41 = vpop.f32.mrf.mxu0 }
 0x114   : > { %v609_v42 = vadd.f32 %v1881_v36, %v608_v41 }
 0x116   : > { %v1514_v43 = vpop.eup %1513  ;;  %v1433_v44 = vmul.f32 -1.442695, %v609_v42 }
 0x117   : > { %v653_v45 = vadd.f32 1.0, %v1514_v43 }
 0x118   : > { %1515 = vpow2.f32 %v1433_v44 }
 0x119   : > { %1517 = vrcp.f32 %v653_v45  ;;  %v672_v55 = vand.u32 2147483648, %v653_v45  ;;  %v670_v58 = vand.u32 2147483647, %v653_v45  ;;  %vm666_vm5 = vweird.f32 %v653_v45 }
 0x11b   : > { %v611_v46 = vpop.f32.mrf.mxu0  ;;  %v673_v0 = vor.u32 1.1754944e-38, %v672_v55  ;;  %vm671_vm7 = vcmp.eq.f32.partialorder %v670_v58, 8.507059e+37 }
 0x11c   : > { %v612_v47 = vadd.f32 %v1881_v36, %v611_v46 }
 0x11e   : > { %v1516_v48 = vpop.eup %1515  ;;  %v1434_v49 = vmul.f32 -1.442695, %v612_v47 }
 0x11f   : > { %v1518_v50 = vpop.eup %1517  ;;  %v654_v51 = vadd.f32 1.0, %v1516_v48 }
 0x120   : > { %1519 = vpow2.f32 %v1434_v49  ;;  %v662_v52 = vmul.f32 %v1518_v50, %v653_v45  ;;  %vm667_vm4 = vweird.f32 %v1518_v50 }
 0x121   : > { %1521 = vrcp.f32 %v654_v51  ;;  %vm668_vm6 = vmor %vm666_vm5, %vm667_vm4  ;;  %v687_v7 = vand.u32 2147483648, %v654_v51  ;;  %v685_v10 = vand.u32 2147483647, %v654_v51  ;;  %vm681_vm9 = vweird.f32 %v654_v51 }
 0x122   : > { %v663_v53 = vsub.f32 1.0, %v662_v52 }
 0x123   : > { %v614_v54 = vpop.f32.mrf.mxu0  ;;  %v688_v18 = vor.u32 1.1754944e-38, %v687_v7  ;;  %vm686_vm11 = vcmp.eq.f32.partialorder %v685_v10, 8.507059e+37 }
 0x124   : > { %v615_v56 = vadd.f32 %v1881_v36, %v614_v54  ;;  %v664_v57 = vmul.f32 %v1518_v50, %v663_v53 }
 0x126   : > { %v1520_v59 = vpop.eup %1519  ;;  %v1435_v60 = vmul.f32 -1.442695, %v615_v56  ;;  %v665_v61 = vadd.f32 %v1518_v50, %v664_v57 }
 0x127   : > { %v1522_v62 = vpop.eup %1521  ;;  %v655_v63 = vadd.f32 1.0, %v1520_v59 }
 0x128   : > { %1523 = vpow2.f32 %v1435_v60  ;;  %v669_v1 = vsel %vm668_vm6, %v1518_v50, %v665_v61  ;;  %v677_v2 = vmul.f32 %v1522_v62, %v654_v51  ;;  %vm682_vm8 = vweird.f32 %v1522_v62 }
 0x129   : > { %1525 = vrcp.f32 %v655_v63  ;;  %v674_v3 = vsel %vm671_vm7, %v673_v0, %v669_v1  ;;  %vm683_vm10 = vmor %vm681_vm9, %vm682_vm8  ;;  %v702_v23 = vand.u32 2147483648, %v655_v63  ;;  %v700_v25 = vand.u32 2147483647, %v655_v63 }
 0x12a   : > { %v623_v4 = vpop.f32.mrf.mxu3  ;;  %817 = vmatmul.f32.vlgmr.msra.gmra.mxu1 %v674_v3  ;;  %v678_v5 = vsub.f32 1.0, %v677_v2  ;;  %vm696_vm13 = vweird.f32 %v655_v63 }
 0x12b   : > { %v624_v6 = vadd.f32 %v1881_v36, %v623_v4  ;;  %v703_v30 = vor.u32 1.1754944e-38, %v702_v23  ;;  %vm701_vm15 = vcmp.eq.f32.partialorder %v700_v25, 8.507059e+37 }
 0x12c   : > { %v617_v8 = vpop.f32.mrf.mxu0  ;;  %v679_v9 = vmul.f32 %v1522_v62, %v678_v5 }
 0x12d   : > { %v1438_v11 = vmul.f32 -1.442695, %v624_v6  ;;  %v618_v12 = vadd.f32 %v1881_v36, %v617_v8 }
 0x12e   : > { %v1524_v13 = vpop.eup %1523  ;;  %v680_v14 = vadd.f32 %v1522_v62, %v679_v9 }
 0x12f   : > { %v1526_v15 = vpop.eup %1525  ;;  %v656_v16 = vadd.f32 1.0, %v1524_v13  ;;  %1527 = vpow2.f32 %v1438_v11  ;;  %v1436_v17 = vmul.f32 -1.442695, %v618_v12 }
 0x130   : > { %v684_v19 = vsel %vm683_vm10, %v1522_v62, %v680_v14  ;;  %v692_v20 = vmul.f32 %v1526_v15, %v655_v63  ;;  %vm697_vm12 = vweird.f32 %v1526_v15 }
 0x131   : > { %1529 = vrcp.f32 %v656_v16  ;;  %v689_v21 = vsel %vm686_vm11, %v688_v18, %v684_v19  ;;  %vm698_vm14 = vmor %vm696_vm13, %vm697_vm12  ;;  %v717_v40 = vand.u32 2147483648, %v656_v16  ;;  %v715_v43 = vand.u32 2147483647, %v656_v16 }
 0x132   : > { %1531 = vpow2.f32 %v1436_v17  ;;  %820 = vmatmul.f32.gmra.mxu1 %v689_v21  ;;  %v693_v22 = vsub.f32 1.0, %v692_v20  ;;  %vm711_vm2 = vweird.f32 %v656_v16 }
 0x133   : > { %v718_v49 = vor.u32 1.1754944e-38, %v717_v40  ;;  %vm716_vm4 = vcmp.eq.f32.partialorder %v715_v43, 8.507059e+37 }
 0x134   : > { %v694_v24 = vmul.f32 %v1526_v15, %v693_v22 }
 0x135   : > { %v1528_v26 = vpop.eup %1527 }
 0x136   : > { %v659_v27 = vadd.f32 1.0, %v1528_v26  ;;  %v695_v28 = vadd.f32 %v1526_v15, %v694_v24 }
 0x137   : > { %v1530_v29 = vpop.eup %1529 }
 0x138   : > { %v1532_v31 = vpop.eup %1531  ;;  %1533 = vrcp.f32 %v659_v27  ;;  %v699_v32 = vsel %vm698_vm14, %v1526_v15, %v695_v28  ;;  %v707_v33 = vmul.f32 %v1530_v29, %v656_v16  ;;  %vm712_vm1 = vweird.f32 %v1530_v29 }
 0x139   : > { %v657_v34 = vadd.f32 1.0, %v1532_v31  ;;  %v704_v35 = vsel %vm701_vm15, %v703_v30, %v699_v32  ;;  %vm713_vm3 = vmor %vm711_vm2, %vm712_vm1  ;;  %v762_v55 = vand.u32 2147483648, %v659_v27  ;;  %vm756_vm6 = vweird.f32 %v659_v27  ;;  %v1897_v30 = vld [vmem:[%s2004_s6] ss:$0 sm:$0xff] }
 0x13a   : > { %v626_v37 = vpop.f32.mrf.mxu3  ;;  %823 = vmatmul.f32.gmra.mxu1 %v704_v35  ;;  %v708_v38 = vsub.f32 1.0, %v707_v33 }
 0x13b   : > { %1535 = vrcp.f32 %v657_v34  ;;  %v627_v39 = vadd.f32 %v1881_v36, %v626_v37  ;;  %v763_v61 = vor.u32 1.1754944e-38, %v762_v55  ;;  %v732_v62 = vand.u32 2147483648, %v657_v34 }
 0x13c   : > { %v620_v41 = vpop.f32.mrf.mxu0  ;;  %v709_v42 = vmul.f32 %v1530_v29, %v708_v38  ;;  %v730_v1 = vand.u32 2147483647, %v657_v34  ;;  %vm726_vm10 = vweird.f32 %v657_v34 }
 0x13d   : > { %v1439_v44 = vmul.f32 -1.442695, %v627_v39  ;;  %v621_v45 = vadd.f32 %v1881_v36, %v620_v41  ;;  %v760_v36 = vand.u32 2147483647, %v659_v27  ;;  %v733_v7 = vor.u32 1.1754944e-38, %v732_v62 }
 0x13e   : > { %v1534_v46 = vpop.eup %1533  ;;  %v710_v47 = vadd.f32 %v1530_v29, %v709_v42  ;;  %vm731_vm12 = vcmp.eq.f32.partialorder %v730_v1, 8.507059e+37 }
 0x13f   : > { %1537 = vpow2.f32 %v1439_v44  ;;  %v1437_v48 = vmul.f32 -1.442695, %v621_v45  ;;  %v752_v50 = vmul.f32 %v1534_v46, %v659_v27  ;;  %vm757_vm5 = vweird.f32 %v1534_v46 }
 0x140   : > { %v714_v51 = vsel %vm713_vm3, %v1530_v29, %v710_v47  ;;  %vm758_vm7 = vmor %vm756_vm6, %vm757_vm5  ;;  %vm761_vm9 = vcmp.eq.f32.partialorder %v760_v36, 8.507059e+37 }
 0x141   : > { %v1536_v52 = vpop.eup %1535  ;;  %1539 = vpow2.f32 %v1437_v48  ;;  %v719_v53 = vsel %vm716_vm4, %v718_v49, %v714_v51  ;;  %v753_v54 = vsub.f32 1.0, %v752_v50 }
 0x142   : > { %826 = vmatmul.f32.vlgmr.msra.gmra.mxu2 %v719_v53  ;;  %v722_v56 = vmul.f32 %v1536_v52, %v657_v34  ;;  %vm727_vm8 = vweird.f32 %v1536_v52  ;;  %v1905_v53 = vld [vmem:[%s2005_s7] ss:$0 sm:$0xff] }
 0x143   : > { %v754_v57 = vmul.f32 %v1534_v46, %v753_v54  ;;  %vm728_vm11 = vmor %vm726_vm10, %vm727_vm8 }
 0x144   : > { %v723_v58 = vsub.f32 1.0, %v722_v56 }
 0x145   : > { %v1538_v59 = vpop.eup %1537  ;;  %v755_v60 = vadd.f32 %v1534_v46, %v754_v57 }
 0x146   : > { %v660_v63 = vadd.f32 1.0, %v1538_v59  ;;  %v724_v0 = vmul.f32 %v1536_v52, %v723_v58 }
 0x147   : > { %v1540_v2 = vpop.eup %1539  ;;  %v759_v3 = vsel %vm758_vm7, %v1534_v46, %v755_v60 }
 0x148   : > { %1541 = vrcp.f32 %v660_v63  ;;  %v658_v4 = vadd.f32 1.0, %v1540_v2  ;;  %v764_v5 = vsel %vm761_vm9, %v763_v61, %v759_v3  ;;  %v725_v6 = vadd.f32 %v1536_v52, %v724_v0 }
 0x149   : > { %835 = vmatmul.f32.vlgmr.msrb.gmra.mxu3 %v764_v5  ;;  %v777_v15 = vand.u32 2147483648, %v660_v63  ;;  %v775_v17 = vand.u32 2147483647, %v660_v63  ;;  %vm771_vm14 = vweird.f32 %v660_v63 }
 0x14a   : > { %1543 = vrcp.f32 %v658_v4  ;;  %v729_v8 = vsel %vm728_vm11, %v1536_v52, %v725_v6  ;;  %v747_v19 = vand.u32 2147483648, %v658_v4  ;;  %v745_v22 = vand.u32 2147483647, %v658_v4 }
 0x14b   : > { %v734_v9 = vsel %vm731_vm12, %v733_v7, %v729_v8  ;;  %v778_v23 = vor.u32 1.1754944e-38, %v777_v15  ;;  %vm776_vm2 = vcmp.eq.f32.partialorder %v775_v17, 8.507059e+37  ;;  %vm741_vm3 = vweird.f32 %v658_v4 }
 0x14c   : > { %829 = vmatmul.f32.gmra.mxu2 %v734_v9  ;;  %v748_v27 = vor.u32 1.1754944e-38, %v747_v19  ;;  %vm746_vm5 = vcmp.eq.f32.partialorder %v745_v22, 8.507059e+37 }
 0x14e   : > { %v1542_v10 = vpop.eup %1541 }
 0x14f   : > { %v767_v11 = vmul.f32 %v1542_v10, %v660_v63  ;;  %vm772_vm13 = vweird.f32 %v1542_v10 }
 0x150   : > { %v1544_v12 = vpop.eup %1543  ;;  %vm773_vm1 = vmor %vm771_vm14, %vm772_vm13 }
 0x151   : > { %v768_v13 = vsub.f32 1.0, %v767_v11  ;;  %v737_v14 = vmul.f32 %v1544_v12, %v658_v4  ;;  %vm742_vm15 = vweird.f32 %v1544_v12 }
 0x152   : > { %vm743_vm4 = vmor %vm741_vm3, %vm742_vm15 }
 0x153   : > { %v769_v16 = vmul.f32 %v1542_v10, %v768_v13  ;;  %v738_v18 = vsub.f32 1.0, %v737_v14 }
 0x155   : > { %v770_v20 = vadd.f32 %v1542_v10, %v769_v16  ;;  %v739_v21 = vmul.f32 %v1544_v12, %v738_v18 }
 0x157   : > { %v774_v24 = vsel %vm773_vm1, %v1542_v10, %v770_v20  ;;  %v740_v25 = vadd.f32 %v1544_v12, %v739_v21 }
 0x158   : > { %v779_v26 = vsel %vm776_vm2, %v778_v23, %v774_v24 }
 0x159   : > { %838 = vmatmul.f32.gmra.mxu3 %v779_v26  ;;  %v744_v28 = vsel %vm743_vm4, %v1544_v12, %v740_v25 }
 0x15a   : > { %v749_v29 = vsel %vm746_vm5, %v748_v27, %v744_v28 }
 0x15b   : > { %832 = vmatmul.f32.gmra.mxu2 %v749_v29 }
 0x1a7   : > { %v818_v31 = vpop.f32.mrf.mxu1 }
 0x1a8   : > { %v819_v32 = vadd.f32 %v1897_v30, %v818_v31 }
 0x1aa   : > { %v1440_v33 = vmul.f32 -1.442695, %v819_v32 }
 0x1ac   : > { %1545 = vpow2.f32 %v1440_v33 }
 0x1af   : > { %v821_v34 = vpop.f32.mrf.mxu1 }
 0x1b0   : > { %v822_v35 = vadd.f32 %v1897_v30, %v821_v34 }
 0x1b2   : > { %v1546_v37 = vpop.eup %1545  ;;  %v1441_v38 = vmul.f32 -1.442695, %v822_v35 }
 0x1b3   : > { %v866_v39 = vadd.f32 1.0, %v1546_v37 }
 0x1b4   : > { %1547 = vpow2.f32 %v1441_v38 }
 0x1b5   : > { %1549 = vrcp.f32 %v866_v39  ;;  %v885_v48 = vand.u32 2147483648, %v866_v39  ;;  %v883_v50 = vand.u32 2147483647, %v866_v39  ;;  %vm879_vm7 = vweird.f32 %v866_v39 }
 0x1b7   : > { %v824_v40 = vpop.f32.mrf.mxu1  ;;  %v886_v56 = vor.u32 1.1754944e-38, %v885_v48  ;;  %vm884_vm9 = vcmp.eq.f32.partialorder %v883_v50, 8.507059e+37 }
 0x1b8   : > { %v825_v41 = vadd.f32 %v1897_v30, %v824_v40 }
 0x1ba   : > { %v1548_v42 = vpop.eup %1547  ;;  %v1442_v43 = vmul.f32 -1.442695, %v825_v41 }
 0x1bb   : > { %v1550_v44 = vpop.eup %1549  ;;  %v867_v45 = vadd.f32 1.0, %v1548_v42 }
 0x1bc   : > { %1551 = vpow2.f32 %v1442_v43  ;;  %v875_v46 = vmul.f32 %v1550_v44, %v866_v39  ;;  %vm880_vm6 = vweird.f32 %v1550_v44 }
 0x1bd   : > { %1553 = vrcp.f32 %v867_v45  ;;  %vm881_vm8 = vmor %vm879_vm7, %vm880_vm6  ;;  %v900_v63 = vand.u32 2147483648, %v867_v45  ;;  %v898_v2 = vand.u32 2147483647, %v867_v45  ;;  %vm894_vm11 = vweird.f32 %v867_v45 }
 0x1be   : > { %v876_v47 = vsub.f32 1.0, %v875_v46 }
 0x1bf   : > { %v901_v5 = vor.u32 1.1754944e-38, %v900_v63  ;;  %vm899_vm13 = vcmp.eq.f32.partialorder %v898_v2, 8.507059e+37 }
 0x1c0   : > { %v877_v49 = vmul.f32 %v1550_v44, %v876_v47 }
 0x1c2   : > { %v1552_v51 = vpop.eup %1551  ;;  %v878_v52 = vadd.f32 %v1550_v44, %v877_v49 }
 0x1c3   : > { %v1554_v54 = vpop.eup %1553  ;;  %v868_v55 = vadd.f32 1.0, %v1552_v51 }
 0x1c4   : > { %v882_v57 = vsel %vm881_vm8, %v1550_v44, %v878_v52  ;;  %v890_v36 = vmul.f32 %v1554_v54, %v867_v45  ;;  %vm895_vm10 = vweird.f32 %v1554_v54 }
 0x1c5   : > { %1555 = vrcp.f32 %v868_v55  ;;  %v827_v58 = vpop.f32.mrf.mxu2  ;;  %v887_v59 = vsel %vm884_vm9, %v886_v56, %v882_v57  ;;  %vm896_vm12 = vmor %vm894_vm11, %vm895_vm10  ;;  %v915_v15 = vand.u32 2147483648, %v868_v55  ;;  %v913_v19 = vand.u32 2147483647, %v868_v55 }
 0x1c6   : > { %v828_v60 = vadd.f32 %v1897_v30, %v827_v58  ;;  %v998_v61 = vmul.f32 %v1905_v53, %v887_v59  ;;  %v891_v62 = vsub.f32 1.0, %v890_v36  ;;  %vm909_vm15 = vweird.f32 %v868_v55 }
 0x1c7   : > { %v916_v23 = vor.u32 1.1754944e-38, %v915_v15  ;;  %vm914_vm2 = vcmp.eq.f32.partialorder %v913_v19, 8.507059e+37 }
 0x1c8   : > { %v1443_v0 = vmul.f32 -1.442695, %v828_v60  ;;  %1006 = vadd.xlane.f32.xlu0 %v998_v61  ;;  %v892_v1 = vmul.f32 %v1554_v54, %v891_v62 }
 0x1ca   : > { %1557 = vpow2.f32 %v1443_v0  ;;  %v893_v3 = vadd.f32 %v1554_v54, %v892_v1 }
 0x1cb   : > { %v1556_v4 = vpop.eup %1555 }
 0x1cc   : > { %v836_v6 = vpop.f32.mrf.mxu3  ;;  %v897_v7 = vsel %vm896_vm12, %v1554_v54, %v893_v3  ;;  %v905_v8 = vmul.f32 %v1556_v4, %v868_v55  ;;  %vm910_vm14 = vweird.f32 %v1556_v4 }
 0x1cd   : > { %v837_v9 = vadd.f32 %v1897_v30, %v836_v6  ;;  %v902_v10 = vsel %vm899_vm13, %v901_v5, %v897_v7  ;;  %vm911_vm1 = vmor %vm909_vm15, %vm910_vm14 }
 0x1ce   : > { %v999_v11 = vmul.f32 %v1905_v53, %v902_v10  ;;  %v906_v12 = vsub.f32 1.0, %v905_v8 }
 0x1cf   : > { %v1446_v13 = vmul.f32 -1.442695, %v837_v9  ;;  %v830_v14 = vpop.f32.mrf.mxu2 }
 0x1d0   : > { %v1558_v16 = vpop.eup %1557  ;;  %v831_v17 = vadd.f32 %v1897_v30, %v830_v14  ;;  %1008 = vadd.xlane.f32.xlu1 %v999_v11  ;;  %v907_v18 = vmul.f32 %v1556_v4, %v906_v12 }
 0x1d1   : > { %v869_v20 = vadd.f32 1.0, %v1558_v16  ;;  %1559 = vpow2.f32 %v1446_v13 }
 0x1d2   : > { %v1444_v21 = vmul.f32 -1.442695, %v831_v17  ;;  %v908_v22 = vadd.f32 %v1556_v4, %v907_v18 }
 0x1d3   : > { %1561 = vrcp.f32 %v869_v20  ;;  %v930_v38 = vand.u32 2147483648, %v869_v20  ;;  %v928_v41 = vand.u32 2147483647, %v869_v20  ;;  %vm924_vm4 = vweird.f32 %v869_v20 }
 0x1d4   : > { %1563 = vpow2.f32 %v1444_v21  ;;  %v912_v24 = vsel %vm911_vm1, %v1556_v4, %v908_v22 }
 0x1d5   : > { %v917_v25 = vsel %vm914_vm2, %v916_v23, %v912_v24  ;;  %v931_v47 = vor.u32 1.1754944e-38, %v930_v38  ;;  %vm929_vm6 = vcmp.eq.f32.partialorder %v928_v41, 8.507059e+37  ;;  %v1035_v41 = vld [vmem:[%s1925_s20 + $0x8] sm:$0xff] }
 0x1d6   : > { %v1000_v26 = vmul.f32 %v1905_v53, %v917_v25 }
 0x1d7   : > { %v1560_v27 = vpop.eup %1559 }
 0x1d8   : > { %v872_v28 = vadd.f32 1.0, %v1560_v27  ;;  %1010 = vadd.xlane.f32.xlu2 %v1000_v26 }
 0x1d9   : > { %v1562_v29 = vpop.eup %1561 }
 0x1da   : > { %v1564_v31 = vpop.eup %1563  ;;  %1565 = vrcp.f32 %v872_v28  ;;  %v920_v32 = vmul.f32 %v1562_v29, %v869_v20  ;;  %vm925_vm3 = vweird.f32 %v1562_v29  ;;  %v975_v54 = vand.u32 2147483648, %v872_v28 }
 0x1db   : > { %v870_v33 = vadd.f32 1.0, %v1564_v31  ;;  %vm926_vm5 = vmor %vm924_vm4, %vm925_vm3  ;;  %vm969_vm8 = vweird.f32 %v872_v28 }
 0x1dc   : > { %v839_v34 = vpop.f32.mrf.mxu3  ;;  %v921_v35 = vsub.f32 1.0, %v920_v32  ;;  %v976_v60 = vor.u32 1.1754944e-38, %v975_v54 }
 0x1dd   : > { %1567 = vrcp.f32 %v870_v33  ;;  %v840_v37 = vadd.f32 %v1897_v30, %v839_v34  ;;  %v945_v61 = vand.u32 2147483648, %v870_v33  ;;  %v943_v0 = vand.u32 2147483647, %v870_v33  ;;  %v1927_v34 = vld [vmem:[#allocation2] ss:$0 sm:$0xff] }
 0x1de   : > { %v833_v39 = vpop.f32.mrf.mxu2  ;;  %v922_v40 = vmul.f32 %v1562_v29, %v921_v35  ;;  %vm939_vm12 = vweird.f32 %v870_v33  ;;  %v1034_v35 = vld [vmem:[%s1925_s20] sm:$0xff] }
 0x1df   : > { %v1447_v42 = vmul.f32 -1.442695, %v840_v37  ;;  %v834_v43 = vadd.f32 %v1897_v30, %v833_v39  ;;  %v973_v30 = vand.u32 2147483647, %v872_v28  ;;  %v946_v7 = vor.u32 1.1754944e-38, %v945_v61 }
 0x1e0   : > { %v1566_v44 = vpop.eup %1565  ;;  %v923_v45 = vadd.f32 %v1562_v29, %v922_v40  ;;  %vm944_vm14 = vcmp.eq.f32.partialorder %v943_v0, 8.507059e+37 }
 0x1e1   : > { %1569 = vpow2.f32 %v1447_v42  ;;  %v1445_v46 = vmul.f32 -1.442695, %v834_v43  ;;  %v965_v48 = vmul.f32 %v1566_v44, %v872_v28  ;;  %vm970_vm7 = vweird.f32 %v1566_v44 }
 0x1e2   : > { %v927_v49 = vsel %vm926_vm5, %v1562_v29, %v923_v45  ;;  %vm971_vm9 = vmor %vm969_vm8, %vm970_vm7  ;;  %vm974_vm11 = vcmp.eq.f32.partialorder %v973_v30, 8.507059e+37  ;;  %vm1042_vm8 = vcmp.ne.f32.partialorder %v1034_v35, 0.0 }
 0x1e3   : > { %v1568_v50 = vpop.eup %1567  ;;  %1571 = vpow2.f32 %v1445_v46  ;;  %v932_v51 = vsel %vm929_vm6, %v931_v47, %v927_v49  ;;  %v966_v52 = vsub.f32 1.0, %v965_v48 }
 0x1e4   : > { %v1001_v55 = vmul.f32 %v1905_v53, %v932_v51  ;;  %v935_v56 = vmul.f32 %v1568_v50, %v870_v33  ;;  %vm940_vm10 = vweird.f32 %v1568_v50  ;;  %v1036_v51 = vld [vmem:[%s1925_s20 + $0x10] sm:$0xff] }
 0x1e5   : > { %v967_v57 = vmul.f32 %v1566_v44, %v966_v52  ;;  %vm941_vm13 = vmor %vm939_vm12, %vm940_vm10  ;;  %vm1043_vm10 = vcmp.ne.f32.partialorder %v1035_v41, 0.0 }
 0x1e6   : > { %1012 = vadd.xlane.f32.xlu2 %v1001_v55  ;;  %v936_v36 = vsub.f32 1.0, %v935_v56 }
 0x1e7   : > { %v1570_v58 = vpop.eup %1569  ;;  %v968_v59 = vadd.f32 %v1566_v44, %v967_v57 }
 0x1e8   : > { %v873_v62 = vadd.f32 1.0, %v1570_v58  ;;  %v937_v63 = vmul.f32 %v1568_v50, %v936_v36 }
 0x1e9   : > { %v1572_v1 = vpop.eup %1571  ;;  %v972_v2 = vsel %vm971_vm9, %v1566_v44, %v968_v59  ;;  %vm1058_vm9 = vcmask 7168  }
 0x1ea   : > { %1573 = vrcp.f32 %v873_v62  ;;  %v871_v3 = vadd.f32 1.0, %v1572_v1  ;;  %v977_v4 = vsel %vm974_vm11, %v976_v60, %v972_v2  ;;  %v938_v5 = vadd.f32 %v1568_v50, %v937_v63 }
 0x1eb   : > { %v1004_v6 = vmul.f32 %v1905_v53, %v977_v4  ;;  %v990_v16 = vand.u32 2147483648, %v873_v62  ;;  %v988_v18 = vand.u32 2147483647, %v873_v62  ;;  %vm984_vm1 = vweird.f32 %v873_v62 }
 0x1ec   : > { %1575 = vrcp.f32 %v871_v3  ;;  %v942_v8 = vsel %vm941_vm13, %v1568_v50, %v938_v5  ;;  %v960_v20 = vand.u32 2147483648, %v871_v3  ;;  %v958_v23 = vand.u32 2147483647, %v871_v3 }
 0x1ed   : > { %v947_v9 = vsel %vm944_vm14, %v946_v7, %v942_v8  ;;  %v991_v24 = vor.u32 1.1754944e-38, %v990_v16  ;;  %vm989_vm4 = vcmp.eq.f32.partialorder %v988_v18, 8.507059e+37  ;;  %vm954_vm5 = vweird.f32 %v871_v3  ;;  %v1037_v7 = vld [vmem:[%s1925_s20 + $0x18] sm:$0xff] }
 0x1ee   : > { %1018 = vadd.xlane.f32.xlu2 %v1004_v6  ;;  %v1002_v10 = vmul.f32 %v1905_v53, %v947_v9  ;;  %v961_v28 = vor.u32 1.1754944e-38, %v960_v20  ;;  %vm959_vm7 = vcmp.eq.f32.partialorder %v958_v23, 8.507059e+37  ;;  %vm1044_vm11 = vcmp.ne.f32.partialorder %v1036_v51, 0.0 }
 0x1ef   : > { %v1628_v60 = vmov 0   ;;  %vm1045_vm12 = vcmp.ne.f32.partialorder %v1037_v7, 0.0 }
 0x1f0   : > { %v1574_v11 = vpop.eup %1573  ;;  %1014 = vadd.xlane.f32.xlu0 %v1002_v10  ;;  %1498 = vset.pattern.permute.xlu1 %v1628_v60 }
 0x1f1   : > { %v980_v12 = vmul.f32 %v1574_v11, %v873_v62  ;;  %vm985_vm15 = vweird.f32 %v1574_v11  ;;  %1499 = vset.pattern.permute.xlu2 %v1628_v60  ;;  %1500 = vset.pattern.permute.xlu0 %v1628_v60 }
 0x1f2   : > { %v1576_v13 = vpop.eup %1575  ;;  %vm986_vm3 = vmor %vm984_vm1, %vm985_vm15 }
 0x1f3   : > { %v981_v14 = vsub.f32 1.0, %v980_v12  ;;  %v950_v15 = vmul.f32 %v1576_v13, %v871_v3  ;;  %vm955_vm2 = vweird.f32 %v1576_v13 }
 0x1f4   : > { %vm956_vm6 = vmor %vm954_vm5, %vm955_vm2  ;;  %vm1323_vm2 = vcmask 1041409   ;;  %vm1329_vm5 = vcmask 1044484  }
 0x1f5   : > { %v982_v17 = vmul.f32 %v1574_v11, %v981_v14  ;;  %v951_v19 = vsub.f32 1.0, %v950_v15 }
 0x1f7   : > { %v983_v21 = vadd.f32 %v1574_v11, %v982_v17  ;;  %v952_v22 = vmul.f32 %v1576_v13, %v951_v19 }
 0x1f9   : > { %v987_v25 = vsel %vm986_vm3, %v1574_v11, %v983_v21  ;;  %v953_v26 = vadd.f32 %v1576_v13, %v952_v22  ;;  %v1040_v22 = vld [vmem:[%s1925_s20 + $0x30] sm:$0xff]  ;;  %vm1325_vm3 = vcmask 1042434  }
 0x1fa   : > { %v992_v27 = vsel %vm989_vm4, %v991_v24, %v987_v25  ;;  %vm1048_vm13 = vcmp.ne.f32.partialorder %v1040_v22, 0.0  ;;  %vm1327_vm4 = vcmask 1043459  }
 0x1fb   : > { %v1005_v29 = vmul.f32 %v1905_v53, %v992_v27  ;;  %v957_v31 = vsel %vm956_vm6, %v1576_v13, %v953_v26  ;;  %v1038_v27 = vld [vmem:[%s1925_s20 + $0x20] sm:$0xff]  ;;  %vm1331_vm6 = vcmask 1045509  }
 0x1fc   : > { %v962_v32 = vsel %vm959_vm7, %v961_v28, %v957_v31  ;;  %vm1046_vm14 = vcmp.ne.f32.partialorder %v1038_v27, 0.0  ;;  %vm1333_vm7 = vcmask 1046534  }
 0x1fd   : > { %1020 = vadd.xlane.f32.xlu0 %v1005_v29  ;;  %v1003_v33 = vmul.f32 %v1905_v53, %v962_v32 }
 0x1ff   : > { %1016 = vadd.xlane.f32.xlu1 %v1003_v33 }
 0x23b   : > { %v1007_v37 = vpop.xlane.xlu0 %1006 }
 0x23c   : > { %v1026_v38 = vadd.f32 %v1927_v34, %v1007_v37 }
 0x23e   : > { %v1050_v39 = vsel %vm1042_vm8, %v1026_v38, -4.2949673e+09  ;;  %vm1335_vm8 = vcmask 1047559  }
 0x23f   : > { %v1059_v53 = vsel %vm1058_vm9, %v1050_v39, -inf }
 0x240   : > { %v1060_v40 = vrot.slane %v1059_v53, 4 }
 0x242   : > { %v1061_v42 = vmax.f32 %v1059_v53, %v1060_v40 }
 0x243   : > { %v1009_v43 = vpop.xlane.xlu1 %1008 }
 0x244   : > { %v1062_v44 = vrot.slane %v1061_v42, 2  ;;  %v1027_v45 = vadd.f32 %v1927_v34, %v1009_v43 }
 0x246   : > { %v1063_v46 = vmax.f32 %v1061_v42, %v1062_v44  ;;  %v1051_v47 = vsel %vm1043_vm10, %v1027_v45, -4.2949673e+09 }
 0x247   : > { %v1066_v48 = vsel %vm1058_vm9, %v1051_v47, -inf }
 0x248   : > { %v1064_v49 = vrot.slane %v1063_v46, 1  ;;  %v1067_v50 = vrot.slane %v1066_v48, 4 }
 0x24a   : > { %v1065_v52 = vmax.f32 %v1063_v46, %v1064_v49  ;;  %v1068_v54 = vmax.f32 %v1066_v48, %v1067_v50 }
 0x24b   : > { %v1011_v55 = vpop.xlane.xlu2 %1010 }
 0x24c   : > { %v1115_v56 = vsub.f32 %v1050_v39, %v1065_v52  ;;  %v1069_v57 = vrot.slane %v1068_v54, 2  ;;  %v1028_v30 = vadd.f32 %v1927_v34, %v1011_v55 }
 0x24e   : > { %v1123_v36 = vmul.f32 1.442695, %v1115_v56  ;;  %v1070_v58 = vmax.f32 %v1068_v54, %v1069_v57  ;;  %v1052_v59 = vsel %vm1044_vm11, %v1028_v30, -4.2949673e+09 }
 0x24f   : > { %v1073_v61 = vsel %vm1058_vm9, %v1052_v59, -inf }
 0x250   : > { %1577 = vpow2.f32 %v1123_v36  ;;  %v1071_v62 = vrot.slane %v1070_v58, 1  ;;  %v1074_v63 = vrot.slane %v1073_v61, 4 }
 0x252   : > { %v1072_v0 = vmax.f32 %v1070_v58, %v1071_v62  ;;  %v1075_v1 = vmax.f32 %v1073_v61, %v1074_v63 }
 0x254   : > { %v1116_v2 = vsub.f32 %v1051_v47, %v1072_v0  ;;  %v1076_v3 = vrot.slane %v1075_v1, 2  ;;  %v1041_v0 = vld [vmem:[%s1925_s20 + $0x38] sm:$0xff] }
 0x255   : > { %vm1049_vm15 = vcmp.ne.f32.partialorder %v1041_v0, 0.0 }
 0x256   : > { %v1938_v4 = vpop.eup %1577  ;;  %v1125_v5 = vmul.f32 1.442695, %v1116_v2  ;;  %v1077_v6 = vmax.f32 %v1075_v1, %v1076_v3 }
 0x257   : > { %v1139_v8 = vsel %vm1058_vm9, %v1938_v4, 0.0 }
 0x258   : > { %v1140_v9 = vrot.slane %v1139_v8, 4  ;;  %1579 = vpow2.f32 %v1125_v5  ;;  %v1078_v10 = vrot.slane %v1077_v6, 1  ;;  %v1039_v5 = vld [vmem:[%s1925_s20 + $0x28] sm:$0xff] }
 0x259   : > { %v1013_v11 = vpop.xlane.xlu2 %1012  ;;  %vm1047_vm1 = vcmp.ne.f32.partialorder %v1039_v5, 0.0 }
 0x25a   : > { %v1141_v12 = vadd.f32 %v1140_v9, %v1139_v8  ;;  %v1079_v13 = vmax.f32 %v1077_v6, %v1078_v10  ;;  %v1029_v14 = vadd.f32 %v1927_v34, %v1013_v11 }
 0x25c   : > { %v1142_v15 = vrot.slane %v1141_v12, 2  ;;  %v1117_v16 = vsub.f32 %v1052_v59, %v1079_v13  ;;  %v1053_v17 = vsel %vm1045_vm12, %v1029_v14, -4.2949673e+09 }
 0x25d   : > { %v1080_v18 = vsel %vm1058_vm9, %v1053_v17, -inf }
 0x25e   : > { %v1945_v19 = vpop.eup %1579  ;;  %v1127_v20 = vmul.f32 1.442695, %v1117_v16  ;;  %v1081_v21 = vrot.slane %v1080_v18, 4  ;;  %v1143_v23 = vadd.f32 %v1142_v15, %v1141_v12 }
 0x25f   : > { %v1146_v24 = vsel %vm1058_vm9, %v1945_v19, 0.0 }
 0x260   : > { %v1147_v25 = vrot.slane %v1146_v24, 4  ;;  %1581 = vpow2.f32 %v1127_v20  ;;  %v1082_v26 = vmax.f32 %v1080_v18, %v1081_v21  ;;  %v1144_v28 = vrot.slane %v1143_v23, 1 }
 0x261   : > { %v1019_v29 = vpop.xlane.xlu2 %1018 }
 0x262   : > { %v1148_v31 = vadd.f32 %v1147_v25, %v1146_v24  ;;  %v1083_v32 = vrot.slane %v1082_v26, 2  ;;  %v1032_v33 = vadd.f32 %v1927_v34, %v1019_v29  ;;  %v1145_v35 = vadd.f32 %v1144_v28, %v1143_v23 }
 0x263   : > { %v1015_v37 = vpop.xlane.xlu0 %1014 }
 0x264   : > { %v1149_v38 = vrot.slane %v1148_v31, 2  ;;  %v1084_v39 = vmax.f32 %v1082_v26, %v1083_v32  ;;  %v1056_v53 = vsel %vm1048_vm13, %v1032_v33, -4.2949673e+09  ;;  %v1030_v40 = vadd.f32 %v1927_v34, %v1015_v37 }
 0x265   : > { %v1101_v41 = vsel %vm1058_vm9, %v1056_v53, -inf  ;;  %1583 = vrcp.f32 %v1145_v35 }
 0x266   : > { %v1954_v42 = vpop.eup %1581  ;;  %v1085_v43 = vrot.slane %v1084_v39, 1  ;;  %v1102_v44 = vrot.slane %v1101_v41, 4  ;;  %v1054_v45 = vsel %vm1046_vm14, %v1030_v40, -4.2949673e+09  ;;  %v1150_v46 = vadd.f32 %v1149_v38, %v1148_v31 }
 0x267   : > { %v1153_v47 = vsel %vm1058_vm9, %v1954_v42, 0.0  ;;  %v1087_v48 = vsel %vm1058_vm9, %v1054_v45, -inf }
 0x268   : > { %v1154_v49 = vrot.slane %v1153_v47, 4  ;;  %v1086_v50 = vmax.f32 %v1084_v39, %v1085_v43  ;;  %v1103_v51 = vmax.f32 %v1101_v41, %v1102_v44  ;;  %v1088_v52 = vrot.slane %v1087_v48, 4 }
 0x269   : > { %v1151_v54 = vrot.slane %v1150_v46, 1 }
 0x26a   : > { %v1155_v55 = vadd.f32 %v1154_v49, %v1153_v47  ;;  %v1118_v56 = vsub.f32 %v1053_v17, %v1086_v50  ;;  %v1104_v57 = vrot.slane %v1103_v51, 2  ;;  %v1089_v30 = vmax.f32 %v1087_v48, %v1088_v52 }
 0x26b   : > { %v1584_v36 = vpop.eup %1583  ;;  %v1152_v58 = vadd.f32 %v1151_v54, %v1150_v46 }
 0x26c   : > { %v1156_v59 = vrot.slane %v1155_v55, 2  ;;  %v1129_v60 = vmul.f32 1.442695, %v1118_v56  ;;  %v1105_v61 = vmax.f32 %v1103_v51, %v1104_v57  ;;  %v1090_v62 = vrot.slane %v1089_v30, 2 }
 0x26d   : > { %v1203_v63 = vmul.f32 %v1584_v36, %v1938_v4  ;;  %1585 = vrcp.f32 %v1152_v58 }
 0x26e   : > { %1587 = vpow2.f32 %v1129_v60  ;;  %v1106_v1 = vrot.slane %v1105_v61, 1  ;;  %v1091_v2 = vmax.f32 %v1089_v30, %v1090_v62  ;;  %v1157_v3 = vadd.f32 %v1156_v59, %v1155_v55 }
 0x26f   : > { %1213 = vperm.xlu1 %1498, %v1203_v63  }
 0x270   : > { %v1107_v6 = vmax.f32 %v1105_v61, %v1106_v1  ;;  %v1092_v7 = vrot.slane %v1091_v2, 1  ;;  %v1021_v8 = vpop.xlane.xlu0 %1020  ;;  %v1158_v9 = vrot.slane %v1157_v3, 1 }
 0x271   : > { %v1033_v10 = vadd.f32 %v1927_v34, %v1021_v8 }
 0x272   : > { %v1121_v11 = vsub.f32 %v1056_v53, %v1107_v6  ;;  %v1093_v12 = vmax.f32 %v1091_v2, %v1092_v7  ;;  %v1017_v13 = vpop.xlane.xlu1 %1016  ;;  %v1159_v4 = vadd.f32 %v1158_v9, %v1157_v3 }
 0x273   : > { %v1586_v14 = vpop.eup %1585  ;;  %v1057_v15 = vsel %vm1049_vm15, %v1033_v10, -4.2949673e+09  ;;  %v1031_v16 = vadd.f32 %v1927_v34, %v1017_v13 }
 0x274   : > { %v1588_v17 = vpop.eup %1587  ;;  %v1135_v18 = vmul.f32 1.442695, %v1121_v11  ;;  %v1119_v20 = vsub.f32 %v1054_v45, %v1093_v12  ;;  %v1108_v21 = vsel %vm1058_vm9, %v1057_v15, -inf  ;;  %v1204_v22 = vmul.f32 %v1586_v14, %v1945_v19 }
 0x275   : > { %v1160_v23 = vsel %vm1058_vm9, %v1588_v17, 0.0  ;;  %v1109_v24 = vrot.slane %v1108_v21, 4  ;;  %v1055_v25 = vsel %vm1047_vm1, %v1031_v16, -4.2949673e+09  ;;  %1589 = vrcp.f32 %v1159_v4 }
 0x276   : > { %v1161_v26 = vrot.slane %v1160_v23, 4  ;;  %1591 = vpow2.f32 %v1135_v18  ;;  %v1131_v27 = vmul.f32 1.442695, %v1119_v20  ;;  %v1094_v28 = vsel %vm1058_vm9, %v1055_v25, -inf  ;;  %1218 = vperm.xlu2 %1499, %v1204_v22  }
 0x277   : > { %v1110_v29 = vmax.f32 %v1108_v21, %v1109_v24  ;;  %v1095_v34 = vrot.slane %v1094_v28, 4 }
 0x278   : > { %v1162_v31 = vadd.f32 %v1161_v26, %v1160_v23  ;;  %1593 = vpow2.f32 %v1131_v27 }
 0x279   : > { %v1111_v32 = vrot.slane %v1110_v29, 2  ;;  %v1096_v33 = vmax.f32 %v1094_v28, %v1095_v34 }
 0x27a   : > { %v1163_v35 = vrot.slane %v1162_v31, 2 }
 0x27b   : > { %v1590_v37 = vpop.eup %1589  ;;  %v1112_v19 = vmax.f32 %v1110_v29, %v1111_v32  ;;  %v1097_v38 = vrot.slane %v1096_v33, 2 }
 0x27c   : > { %v1592_v39 = vpop.eup %1591  ;;  %v1205_v53 = vmul.f32 %v1590_v37, %v1954_v42  ;;  %v1164_v40 = vadd.f32 %v1163_v35, %v1162_v31  ;;  %v1609_v35 = vld [vmem:[%s1707_s19] sm:$0xff] }
 0x27d   : > { %v1181_v41 = vsel %vm1058_vm9, %v1592_v39, 0.0  ;;  %v1113_v43 = vrot.slane %v1112_v19, 1  ;;  %v1098_v44 = vmax.f32 %v1096_v33, %v1097_v38 }
 0x27e   : > { %v1594_v45 = vpop.eup %1593  ;;  %v1182_v46 = vrot.slane %v1181_v41, 4  ;;  %1223 = vperm.xlu0 %1500, %v1205_v53   ;;  %v1165_v47 = vrot.slane %v1164_v40, 1 }
 0x27f   : > { %v1167_v48 = vsel %vm1058_vm9, %v1594_v45, 0.0  ;;  %v1114_v49 = vmax.f32 %v1112_v19, %v1113_v43  ;;  %v1099_v50 = vrot.slane %v1098_v44, 1  ;;  %v1610_v19 = vld [vmem:[%s1707_s19 + $0x10] sm:$0xff] }
 0x280   : > { %v1183_v51 = vadd.f32 %v1182_v46, %v1181_v41  ;;  %v1168_v52 = vrot.slane %v1167_v48, 4  ;;  %v1166_v54 = vadd.f32 %v1165_v47, %v1164_v40  ;;  %v1612_v40 = vld [vmem:[%s1707_s19 + $0x18] sm:$0xff] }
 0x281   : > { %v1122_v55 = vsub.f32 %v1057_v15, %v1114_v49  ;;  %v1100_v56 = vmax.f32 %v1098_v44, %v1099_v50 }
 0x282   : > { %v1184_v57 = vrot.slane %v1183_v51, 2  ;;  %v1169_v42 = vadd.f32 %v1168_v52, %v1167_v48  ;;  %1595 = vrcp.f32 %v1166_v54  ;;  %v1613_v48 = vld [vmem:[%s1707_s19 + $0x20] sm:$0xff] }
 0x283   : > { %v1137_v30 = vmul.f32 1.442695, %v1122_v55  ;;  %v1120_v36 = vsub.f32 %v1055_v25, %v1100_v56 }
 0x284   : > { %v1170_v58 = vrot.slane %v1169_v42, 2  ;;  %v1185_v61 = vadd.f32 %v1184_v57, %v1183_v51  ;;  %v1614_v57 = vld [vmem:[%s1707_s19 + $0x30] sm:$0xff] }
 0x285   : > { %1597 = vpow2.f32 %v1137_v30  ;;  %v1133_v59 = vmul.f32 1.442695, %v1120_v36 }
 0x286   : > { %v1171_v60 = vadd.f32 %v1170_v58, %v1169_v42  ;;  %v1186_v2 = vrot.slane %v1185_v61, 1 }
 0x287   : > { %1599 = vpow2.f32 %v1133_v59 }
 0x288   : > { %v1596_v62 = vpop.eup %1595  ;;  %v1172_v63 = vrot.slane %v1171_v60, 1  ;;  %v1187_v9 = vadd.f32 %v1186_v2, %v1185_v61 }
 0x289   : > { %v1206_v0 = vmul.f32 %v1596_v62, %v1588_v17 }
 0x28a   : > { %v1173_v1 = vadd.f32 %v1172_v63, %v1171_v60 }
 0x28b   : > { %v1598_v3 = vpop.eup %1597  ;;  %1228 = vperm.xlu1 %1498, %v1206_v0  }
 0x28c   : > { %v1188_v5 = vsel %vm1058_vm9, %v1598_v3, 0.0  ;;  %1601 = vrcp.f32 %v1173_v1 }
 0x28d   : > { %v1600_v6 = vpop.eup %1599  ;;  %v1189_v7 = vrot.slane %v1188_v5, 4  ;;  %1603 = vrcp.f32 %v1187_v9 }
 0x28e   : > { %v1174_v8 = vsel %vm1058_vm9, %v1600_v6, 0.0 }
 0x28f   : > { %v1190_v10 = vadd.f32 %v1189_v7, %v1188_v5  ;;  %v1175_v11 = vrot.slane %v1174_v8, 4  ;;  %v1615_v5 = vld [vmem:[%s1707_s19 + $0x28] sm:$0xff] }
 0x291   : > { %v1191_v12 = vrot.slane %v1190_v10, 2  ;;  %v1176_v13 = vadd.f32 %v1175_v11, %v1174_v8 }
 0x292   : > { %v1602_v4 = vpop.eup %1601 }
 0x293   : > { %v1177_v14 = vrot.slane %v1176_v13, 2  ;;  %v1207_v15 = vmul.f32 %v1602_v4, %v1594_v45  ;;  %v1192_v17 = vadd.f32 %v1191_v12, %v1190_v10  ;;  %v1604_v20 = vpop.eup %1603 }
 0x294   : > { %v1209_v23 = vmul.f32 %v1604_v20, %v1592_v39  ;;  %v1611_v39 = vld [vmem:[%s1707_s19 + $0x8] sm:$0xff] }
 0x295   : > { %1233 = vperm.xlu2 %1499, %v1207_v15   ;;  %v1178_v16 = vadd.f32 %v1177_v14, %v1176_v13  ;;  %v1193_v22 = vrot.slane %v1192_v17, 1 }
 0x297   : > { %v1179_v18 = vrot.slane %v1178_v16, 1  ;;  %v1194_v24 = vadd.f32 %v1193_v22, %v1192_v17 }
 0x299   : > { %v1180_v21 = vadd.f32 %v1179_v18, %v1178_v16 }
 0x29b   : > { %1605 = vrcp.f32 %v1180_v21 }
 0x29c   : > { %1607 = vrcp.f32 %v1194_v24  ;;  %v1616_v24 = vld [vmem:[%s1707_s19 + $0x38] sm:$0xff] }
 0x29d   : > { %1243 = vperm.xlu2 %1499, %v1209_v23  }
 0x2a1   : > { %v1606_v25 = vpop.eup %1605 }
 0x2a2   : > { %v1208_v26 = vmul.f32 %v1606_v25, %v1600_v6  ;;  %v1608_v27 = vpop.eup %1607 }
 0x2a3   : > { %v1210_v28 = vmul.f32 %v1608_v27, %v1598_v3 }
 0x2a4   : > { %1238 = vperm.xlu1 %1498, %v1208_v26  }
 0x2ac   : > { %1248 = vperm.xlu1 %1498, %v1210_v28  }
 0x2d0   : > { %v1219_v29 = vpop.permute.xlu2 %1218 }
 0x2d1   : > { %v1252_v53 = vmul.f32 %v1611_v39, %v1219_v29 }
 0x2d3   : > { %v1266_v45 = vsel %vm528_vm0, %v1252_v53, 0.0 }
 0x2d4   : > { %v1267_v52 = vrot.slane %v1266_v45, 4 }
 0x2d6   : > { %v1268_v36 = vadd.f32 %v1267_v52, %v1266_v45 }
 0x2d8   : > { %v1269_v63 = vrot.slane %v1268_v36, 2 }
 0x2da   : > { %v1270_v10 = vadd.f32 %v1269_v63, %v1268_v36 }
 0x2dc   : > { %v1271_v17 = vrot.slane %v1270_v10, 1 }
 0x2e1   : > { %v1214_v34 = vpop.permute.xlu1 %1213 }
 0x2e2   : > { %v1251_v37 = vmul.f32 %v1609_v35, %v1214_v34  ;;  %v1272_v34 = vadd.f32 %v1271_v17, %v1270_v10 }
 0x2e4   : > { %v1259_v43 = vsel %vm528_vm0, %v1251_v37, 0.0 }
 0x2e5   : > { %v1260_v47 = vrot.slane %v1259_v43, 4 }
 0x2e7   : > { %v1261_v55 = vadd.f32 %v1260_v47, %v1259_v43 }
 0x2e9   : > { %v1262_v60 = vrot.slane %v1261_v55, 2 }
 0x2eb   : > { %v1263_v7 = vadd.f32 %v1262_v60, %v1261_v55 }
 0x2ed   : > { %v1264_v14 = vrot.slane %v1263_v7, 1 }
 0x2ef   : > { %v1234_v31 = vpop.permute.xlu2 %1233  ;;  %v1265_v26 = vadd.f32 %v1264_v14, %v1263_v7 }
 0x2f0   : > { %v1224_v32 = vpop.permute.xlu0 %1223  ;;  %v1255_v49 = vmul.f32 %v1613_v48, %v1234_v31 }
 0x2f1   : > { %v1253_v38 = vmul.f32 %v1610_v19, %v1224_v32  ;;  %v1324_v19 = vsel %vm1323_vm2, %v1272_v34, %v1265_v26 }
 0x2f2   : > { %v1287_v56 = vsel %vm528_vm0, %v1255_v49, 0.0 }
 0x2f3   : > { %v1273_v44 = vsel %vm528_vm0, %v1253_v38, 0.0  ;;  %v1288_v59 = vrot.slane %v1287_v56, 4 }
 0x2f4   : > { %v1274_v50 = vrot.slane %v1273_v44, 4 }
 0x2f5   : > { %v1289_v2 = vadd.f32 %v1288_v59, %v1287_v56 }
 0x2f6   : > { %v1275_v30 = vadd.f32 %v1274_v50, %v1273_v44 }
 0x2f7   : > { %v1244_v51 = vpop.permute.xlu2 %1243  ;;  %v1290_v13 = vrot.slane %v1289_v2, 2 }
 0x2f8   : > { %v1257_v42 = vmul.f32 %v1614_v57, %v1244_v51  ;;  %v1276_v62 = vrot.slane %v1275_v30, 2 }
 0x2f9   : > { %v1291_v22 = vadd.f32 %v1290_v13, %v1289_v2 }
 0x2fa   : > { %v1301_v61 = vsel %vm528_vm0, %v1257_v42, 0.0  ;;  %v1277_v8 = vadd.f32 %v1276_v62, %v1275_v30 }
 0x2fb   : > { %v1302_v3 = vrot.slane %v1301_v61, 4  ;;  %v1292_v35 = vrot.slane %v1291_v22, 1 }
 0x2fc   : > { %v1278_v16 = vrot.slane %v1277_v8, 1 }
 0x2fd   : > { %v1229_v33 = vpop.permute.xlu1 %1228  ;;  %v1303_v4 = vadd.f32 %v1302_v3, %v1301_v61  ;;  %v1293_v43 = vadd.f32 %v1292_v35, %v1291_v22 }
 0x2fe   : > { %v1254_v41 = vmul.f32 %v1612_v40, %v1229_v33  ;;  %v1279_v28 = vadd.f32 %v1278_v16, %v1277_v8 }
 0x2ff   : > { %v1304_v23 = vrot.slane %v1303_v4, 2 }
 0x300   : > { %v1280_v46 = vsel %vm528_vm0, %v1254_v41, 0.0  ;;  %v1326_v39 = vsel %vm1325_vm3, %v1279_v28, %v1324_v19 }
 0x301   : > { %v1281_v54 = vrot.slane %v1280_v46, 4  ;;  %v1305_v37 = vadd.f32 %v1304_v23, %v1303_v4 }
 0x303   : > { %v1282_v58 = vadd.f32 %v1281_v54, %v1280_v46  ;;  %v1306_v44 = vrot.slane %v1305_v37, 1 }
 0x305   : > { %v1283_v0 = vrot.slane %v1282_v58, 2  ;;  %v1307_v49 = vadd.f32 %v1306_v44, %v1305_v37 }
 0x307   : > { %v1284_v11 = vadd.f32 %v1283_v0, %v1282_v58 }
 0x309   : > { %v1285_v18 = vrot.slane %v1284_v11, 1 }
 0x30b   : > { %v1286_v31 = vadd.f32 %v1285_v18, %v1284_v11 }
 0x30d   : > { %v1328_v53 = vsel %vm1327_vm4, %v1286_v31, %v1326_v39 }
 0x30e   : > { %v1330_v46 = vsel %vm1329_vm5, %v1293_v43, %v1328_v53 }
 0x316   : > { %v1239_v1 = vpop.permute.xlu1 %1238 }
 0x317   : > { %v1256_v6 = vmul.f32 %v1615_v5, %v1239_v1 }
 0x319   : > { %v1294_v9 = vsel %vm528_vm0, %v1256_v6, 0.0 }
 0x31a   : > { %v1295_v12 = vrot.slane %v1294_v9, 4 }
 0x31c   : > { %v1296_v15 = vadd.f32 %v1295_v12, %v1294_v9 }
 0x31e   : > { %v1297_v20 = vrot.slane %v1296_v15, 2  ;;  %v1249_v21 = vpop.permute.xlu1 %1248 }
 0x31f   : > { %v1258_v25 = vmul.f32 %v1616_v24, %v1249_v21 }
 0x320   : > { %v1298_v27 = vadd.f32 %v1297_v20, %v1296_v15 }
 0x321   : > { %v1308_v29 = vsel %vm528_vm0, %v1258_v25, 0.0 }
 0x322   : > { %v1299_v32 = vrot.slane %v1298_v27, 1  ;;  %v1309_v33 = vrot.slane %v1308_v29, 4 }
 0x324   : > { %v1310_v38 = vadd.f32 %v1309_v33, %v1308_v29  ;;  %v1300_v40 = vadd.f32 %v1299_v32, %v1298_v27 }
 0x326   : > { %v1311_v41 = vrot.slane %v1310_v38, 2  ;;  %v1332_v47 = vsel %vm1331_vm6, %v1300_v40, %v1330_v46 }
 0x327   : > { %v1334_v51 = vsel %vm1333_vm7, %v1307_v49, %v1332_v47 }
 0x328   : > { %v1312_v45 = vadd.f32 %v1311_v41, %v1310_v38 }
 0x32a   : > { %v1313_v48 = vrot.slane %v1312_v45, 1 }
 0x32c   : > { %v1314_v50 = vadd.f32 %v1313_v48, %v1312_v45 }
 0x32e   : > { %v1336_v52 = vsel %vm1335_vm8, %v1314_v50, %v1334_v51 }
 0x32f   : > { %1338 = vst.msk [vmem:[%s375_s21] sm:$0xff] %vm528_vm0, %v1336_v52 }
 0x330 PF: > { %s21_s11 = sadd.s32 1, %s1623_s11  }
 0x331   : > { %p18_p5 = scmp.ge.s32.totalorder %s21_s11, 4  }
 0x333   :  { %20 = sbr.rel (!%p18_p5) target bundleno = 3 (0x3), region = 92 }

</bundles_post_ra>
